<compile_context>
chip_gen: v6e
topology: v6e:2x2x1
jax: 0.10.0
libtpu: 0.0.40
codegen_flags: <defaults>
</compile_context>

<pallas_src>
import functools

import jax
import jax.numpy as jnp
from jax.experimental import pallas as pl
from jax.experimental.pallas import tpu as pltpu


def _round_up(x, m):
    return (x + m - 1) // m * m


_V_EXP = 256        # exponent vocab (already 128-aligned)
_V_FRAC_PAD = 1024  # 1001 -> 1024
_V_PERC_PAD = 128   # 102  -> 128


def _number_emb_kernel(use_perc, compute_dtype, precision,
                       packed_ref, tab_ref, pos_ref, out_ref):
    cdt = compute_dtype
    packed = packed_ref[...]                        # (TN, 8) f32
    tn = packed.shape[0]

    is_pos = packed[:, 0:1]                         # f32 0/1
    exp_idx = packed[:, 1:2].astype(jnp.int32)
    frac_idx = packed[:, 2:3].astype(jnp.int32)
    delta = packed[:, 4:5]                          # f32

    # --- exponent segment: one-hot (TN, 256) x table[0:256] on the MXU -------
    iota_e = jax.lax.broadcasted_iota(jnp.int32, (tn, _V_EXP), 1)
    w_exp = jnp.where(iota_e == exp_idx, 1.0, 0.0).astype(cdt)
    acc = jnp.dot(w_exp, tab_ref[0:_V_EXP, :],
                  preferred_element_type=jnp.float32, precision=precision)

    # --- fraction segment: lerp weights (1-delta, delta) at cols fb, fb+1 ----
    iota_f = jax.lax.broadcasted_iota(jnp.int32, (tn, _V_FRAC_PAD), 1)
    diff = iota_f - frac_idx
    # Build in f32 (v5e has no bf16 VALU); single cast to cdt before the dot.
    w_frac = jnp.where(diff == 0, 1.0 - delta,
                       jnp.where(diff == 1, delta, 0.0)).astype(cdt)
    acc = acc + jnp.dot(w_frac, tab_ref[_V_EXP:_V_EXP + _V_FRAC_PAD, :],
                        preferred_element_type=jnp.float32, precision=precision)

    # --- percentile segment: one-hot (TN, 128) --------------------------------
    if use_perc:
        perc_idx = packed[:, 3:4].astype(jnp.int32)
        iota_p = jax.lax.broadcasted_iota(jnp.int32, (tn, _V_PERC_PAD), 1)
        w_perc = jnp.where(iota_p == perc_idx, 1.0, 0.0).astype(cdt)
        off = _V_EXP + _V_FRAC_PAD
        acc = acc + jnp.dot(w_perc, tab_ref[off:off + _V_PERC_PAD, :],
                            preferred_element_type=jnp.float32,
                            precision=precision)

    # --- is_positive: 2-row table -> VPU broadcast-select, no matmul ----------
    pos0 = pos_ref[0:1, :].astype(jnp.float32)      # (1, Hp)
    pos1 = pos_ref[1:2, :].astype(jnp.float32)
    pos_emb = pos0 + is_pos * (pos1 - pos0)         # (TN, Hp)

    out_ref[...] = (acc + pos_emb).astype(out_ref.dtype)


def init_number_embeddings_params(key, hidden_size, use_number_percentiles):
    """Deterministic N(0,1) init, matching nn.Embedding default."""
    k0, k1, k2, k3 = jax.random.split(key, 4)
    return {
        "is_positive": jax.random.normal(k0, (2, hidden_size), jnp.float32),
        "exponent": jax.random.normal(k1, (256, hidden_size), jnp.float32),
        "fraction_bin": jax.random.normal(k2, (1001, hidden_size), jnp.float32),
        "percentile": (jax.random.normal(k3, (102, hidden_size), jnp.float32)
                       if use_number_percentiles else None),
    }


def prepack_number_embeddings(params, compute_dtype=jnp.bfloat16):
    """One-time packing of the fused [exponent|fraction|percentile] table.

    Do this at parameter-load time so the forward path does not re-stream the
    tables through HBM as plain XLA ops on every call.
    """
    use_perc = params["percentile"] is not None
    H = params["is_positive"].shape[1]
    Hp = _round_up(H, 128)                  # lane-dense columns
    cdt = jnp.dtype(compute_dtype)

    def pad_tab(t, v_pad):
        t = t.astype(jnp.float32)
        return jnp.pad(t, ((0, v_pad - t.shape[0]), (0, Hp - t.shape[1])))

    parts = [pad_tab(params["exponent"], _V_EXP),
             pad_tab(params["fraction_bin"], _V_FRAC_PAD)]
    if use_perc:
        parts.append(pad_tab(params["percentile"], _V_PERC_PAD))
    # K is already a multiple of 128 (1408 or 1280) — no extra rounding.
    table = jnp.concatenate(parts, axis=0).astype(cdt)

    pos_tab = jnp.pad(params["is_positive"].astype(jnp.float32),
                      ((0, 6), (0, Hp - H))).astype(cdt)       # (8, Hp)

    return {"table": table, "pos_tab": pos_tab, "use_perc": use_perc,
            "hidden": H, "hidden_pad": Hp, "compute_dtype": cdt}


def number_embeddings_forward(packed_params, is_positive, exponent, fraction_bin,
                              delta, percentile_values=None, *,
                              tile_n=None, out_dtype=jnp.float32):
    use_perc = packed_params["use_perc"]
    if use_perc and percentile_values is None:
        raise ValueError(
            "percentile_values must be provided if use_number_percentiles is True")

    table = packed_params["table"]          # (K_tot, Hp), compute dtype
    pos_tab = packed_params["pos_tab"]      # (8, Hp),    compute dtype
    H = packed_params["hidden"]
    Hp = packed_params["hidden_pad"]
    cdt = packed_params["compute_dtype"]
    K_tot = table.shape[0]
    odt = jnp.dtype(out_dtype)
    prec = (jax.lax.Precision.HIGHEST
            if cdt == jnp.dtype(jnp.float32) else None)

    B, S = is_positive.shape
    N = B * S

    # --- row-tile selection ----------------------------------------------------
    if tile_n is None:
        # Big tiles amortize per-step overhead on v5e/v6e; 256 keeps large-H
        # configs inside v7x's 64 MiB VMEM.
        tile_n = 512 if Hp <= 2048 else 256
    TN = min(tile_n, _round_up(N, 8))
    if _round_up(N, TN) == TN and TN >= 16:
        TN = _round_up(TN // 2, 8)          # >= 2 grid steps: both v7x TCs get work
    N_pad = _round_up(N, TN)

    # --- single packed (N_pad, 8) f32 input: [is_pos, exp, frac, perc, delta] --
    # Indices are small integers, exactly representable in f32, so one fused DMA
    # stream replaces separate int/float inputs.
    def col(a):
        return jnp.pad(a.reshape(N).astype(jnp.float32), (0, N_pad - N))

    zeros = jnp.zeros((N_pad,), jnp.float32)
    packed = jnp.stack(
        [col(is_positive), col(exponent), col(fraction_bin),
         col(percentile_values) if use_perc else zeros,
         col(delta), zeros, zeros, zeros], axis=1)

    kernel = functools.partial(_number_emb_kernel, use_perc, cdt, prec)

    # --- VMEM budget -------------------------------------------------------------
    it = cdt.itemsize
    tab_bytes = (table.size + pos_tab.size) * it                 # resident tables
    io_bytes = 2 * TN * (8 * 4 + Hp * odt.itemsize)              # dbl-buffered idx/out
    tmp_bytes = TN * K_tot * (it + 8) + 2 * TN * Hp * 4          # weights+iota, acc+pos_emb

    def run(single_buffer_tables):
        # Constant-index resident tables: ask for a single buffer so they are
        # not double-buffered (matters on v7x's 64 MiB VMEM at large H).
        tab_kw = ({"pipeline_mode": pl.Buffered(1)}
                  if single_buffer_tables else {})
        in_specs = [
            pl.BlockSpec((TN, 8), lambda i: (i, 0)),             # packed idx + delta
            pl.BlockSpec((K_tot, Hp), lambda i: (0, 0), **tab_kw),  # fused table
            pl.BlockSpec((8, Hp), lambda i: (0, 0), **tab_kw),      # is_positive table
        ]
        out_spec = pl.BlockSpec((TN, Hp), lambda i: (i, 0))      # lane-dense store
        tab_mult = 1 if single_buffer_tables else 2
        vmem_limit = int(min(max(tab_mult * tab_bytes + io_bytes + tmp_bytes
                                 + (8 << 20), 32 << 20), 48 << 20))
        return pl.pallas_call(
            kernel,
            out_shape=jax.ShapeDtypeStruct((N_pad, Hp), odt),
            grid_spec=pltpu.PrefetchScalarGridSpec(
                num_scalar_prefetch=0,
                grid=(N_pad // TN,),
                in_specs=in_specs,
                out_specs=out_spec),
            compiler_params=pltpu.CompilerParams(
                dimension_semantics=("parallel",),
                vmem_limit_bytes=vmem_limit),
        )(packed, table, pos_tab)

    try:
        out = jax.block_until_ready(run(single_buffer_tables=True))
    except Exception:
        # Fallback (eager mode): previously-validated config without pipeline_mode.
        out = run(single_buffer_tables=False)

    # When TN | N and H % 128 == 0 this is a pure view; otherwise a small slice.
    return out[:N, :H].reshape(B, S, H)


def number_embeddings_reference(params, is_positive, exponent, fraction_bin, delta,
                                percentile_values=None):
    """Pure-JAX reference mirroring the PyTorch forward."""
    e = params["is_positive"][is_positive] + params["exponent"][exponent]
    d = delta[..., None].astype(jnp.float32)
    fb = params["fraction_bin"]
    e = e + fb[fraction_bin] * (1.0 - d) + fb[fraction_bin + 1] * d
    if params["percentile"] is not None:
        e = e + params["percentile"][percentile_values]
    return e.astype(jnp.float32)


if __name__ == "__main__":
    B, S, H = 2, 8, 32
    key = jax.random.PRNGKey(0)
    kp, k1, k2, k3, k4, k5 = jax.random.split(key, 6)

    params = init_number_embeddings_params(kp, H, use_number_percentiles=True)

    is_positive = jax.random.randint(k1, (B, S), 0, 2, jnp.int32)
    exponent = jax.random.randint(k2, (B, S), 0, 256, jnp.int32)
    fraction_bin = jax.random.randint(k3, (B, S), 0, 1000, jnp.int32)  # fb+1 in range
    delta = jax.random.uniform(k4, (B, S), jnp.float32)
    percentile_values = jax.random.randint(k5, (B, S), 0, 102, jnp.int32)

    ref = number_embeddings_reference(params, is_positive, exponent, fraction_bin,
                                      delta, percentile_values)

    # Production path: prepacked bf16 tables, per-segment MXU dots, f32 accumulate.
    packed_bf16 = prepack_number_embeddings(params, compute_dtype=jnp.bfloat16)
    out_bf16 = number_embeddings_forward(packed_bf16, is_positive, exponent,
                                         fraction_bin, delta, percentile_values)
    out_bf16 = jax.block_until_ready(out_bf16)
    assert out_bf16.shape == (B, S, H) and out_bf16.dtype == jnp.float32
    assert jnp.allclose(out_bf16, ref, rtol=5e-2, atol=1e-1), "bf16 path mismatch"

    # Exact validation path: f32 tables, Precision.HIGHEST multi-pass MXU.
    packed_f32 = prepack_number_embeddings(params, compute_dtype=jnp.float32)
    out_f32 = jax.block_until_ready(number_embeddings_forward(
        packed_f32, is_positive, exponent, fraction_bin, delta, percentile_values))
    assert jnp.allclose(out_f32, ref, rtol=2e-5, atol=2e-5), "f32 path mismatch"

    # No-percentile config exercises the K=1280 fused-table layout.
    params_np = dict(params, percentile=None)
    packed_np = prepack_number_embeddings(params_np, compute_dtype=jnp.bfloat16)
    out_np = jax.block_until_ready(number_embeddings_forward(
        packed_np, is_positive, exponent, fraction_bin, delta))
    ref_np = number_embeddings_reference(params_np, is_positive, exponent,
                                         fraction_bin, delta)
    assert jnp.allclose(out_np, ref_np, rtol=5e-2, atol=1e-1), "no-perc mismatch"

    # bf16-output variant (halves HBM writeback when the consumer accepts bf16).
    out_b16o = jax.block_until_ready(number_embeddings_forward(
        packed_bf16, is_positive, exponent, fraction_bin, delta,
        percentile_values, out_dtype=jnp.bfloat16))
    assert out_b16o.dtype == jnp.bfloat16
    assert jnp.allclose(out_b16o.astype(jnp.float32), ref, rtol=5e-2, atol=2e-1), \
        "bf16-output path mismatch"

    print("KERNEL_OK")
</pallas_src>

<mosaic_0001>
module attributes {stable_mosaic.version = 11 : i64} {
  func.func @_number_emb_kernel(%arg0: i32, %arg1: memref<8x8xf32, #tpu.memory_space<vmem>>, %arg2: memref<1408x128xbf16, #tpu.memory_space<vmem>>, %arg3: memref<8x128xbf16, #tpu.memory_space<vmem>>, %arg4: memref<8x128xf32, #tpu.memory_space<vmem>>) attributes {dimension_semantics = [#tpu.dimension_semantics<parallel>], iteration_bounds = array<i64: 2>, scalar_prefetch = 0 : i64, scratch_operands = 0 : i64, tpu.core_type = #tpu.core_type<tc>, window_params = [{transform_indices = @transform_0, window_bounds = array<i64: 8, 8>}, {pipeline_mode = #tpu.pipeline_mode<synchronous>, transform_indices = @transform_1, window_bounds = array<i64: 1408, 128>}, {pipeline_mode = #tpu.pipeline_mode<synchronous>, transform_indices = @transform_2, window_bounds = array<i64: 8, 128>}, {transform_indices = @transform_3, window_bounds = array<i64: 8, 128>}]} {
    %c0 = arith.constant 0 : index
    %c0_0 = arith.constant 0 : index
    %0 = vector.load %arg1[%c0, %c0_0] : memref<8x8xf32, #tpu.memory_space<vmem>>, vector<8x8xf32>
    %1 = vector.extract_strided_slice %0 {offsets = [0, 0], sizes = [8, 1], strides = [1, 1]} : vector<8x8xf32> to vector<8x1xf32>
    %2 = vector.extract_strided_slice %0 {offsets = [0, 1], sizes = [8, 1], strides = [1, 1]} : vector<8x8xf32> to vector<8x1xf32>
    %3 = arith.fptosi %2 : vector<8x1xf32> to vector<8x1xi32>
    %4 = vector.extract_strided_slice %0 {offsets = [0, 2], sizes = [8, 1], strides = [1, 1]} : vector<8x8xf32> to vector<8x1xf32>
    %5 = arith.fptosi %4 : vector<8x1xf32> to vector<8x1xi32>
    %6 = vector.extract_strided_slice %0 {offsets = [0, 4], sizes = [8, 1], strides = [1, 1]} : vector<8x8xf32> to vector<8x1xf32>
    %7 = tpu.iota {dimensions = array<i32: 1>} : vector<8x256xi32>
    %8 = vector.broadcast %3 : vector<8x1xi32> to vector<8x256xi32>
    %9 = arith.cmpi eq, %7, %8 : vector<8x256xi32>
    %cst = arith.constant 1.000000e+00 : f32
    %cst_1 = arith.constant 0.000000e+00 : f32
    %10 = vector.broadcast %cst : f32 to vector<8x256xf32>
    %11 = vector.broadcast %cst_1 : f32 to vector<8x256xf32>
    %12 = arith.select %9, %10, %11 : vector<8x256xi1>, vector<8x256xf32>
    %13 = arith.truncf %12 : vector<8x256xf32> to vector<8x256xbf16>
    %c0_2 = arith.constant 0 : index
    %c0_3 = arith.constant 0 : index
    %14 = vector.load %arg2[%c0_2, %c0_3] : memref<1408x128xbf16, #tpu.memory_space<vmem>>, vector<256x128xbf16>
    %cst_4 = arith.constant dense<0.000000e+00> : vector<8x128xf32>
    %15 = tpu.matmul %13, %14, %cst_4 {dimension_numbers = #tpu.dot_dimension_numbers<[1], [0], [0], [1], [0, 0, 1, 1], [], []>} : vector<8x256xbf16>, vector<256x128xbf16>, vector<8x128xf32> -> vector<8x128xf32>
    %16 = tpu.iota {dimensions = array<i32: 1>} : vector<8x1024xi32>
    %17 = vector.broadcast %5 : vector<8x1xi32> to vector<8x1024xi32>
    %18 = arith.subi %16, %17 : vector<8x1024xi32>
    %c0_i32 = arith.constant 0 : i32
    %19 = vector.broadcast %c0_i32 : i32 to vector<8x1024xi32>
    %20 = arith.cmpi eq, %18, %19 : vector<8x1024xi32>
    %cst_5 = arith.constant 1.000000e+00 : f32
    %21 = vector.broadcast %cst_5 : f32 to vector<8x1xf32>
    %22 = arith.subf %21, %6 : vector<8x1xf32>
    %c1_i32 = arith.constant 1 : i32
    %23 = vector.broadcast %c1_i32 : i32 to vector<8x1024xi32>
    %24 = arith.cmpi eq, %18, %23 : vector<8x1024xi32>
    %cst_6 = arith.constant 0.000000e+00 : f32
    %25 = vector.shape_cast %6 : vector<8x1xf32> to vector<8x1xf32>
    %26 = vector.broadcast %25 : vector<8x1xf32> to vector<8x1024xf32>
    %27 = vector.broadcast %cst_6 : f32 to vector<8x1024xf32>
    %28 = arith.select %24, %26, %27 : vector<8x1024xi1>, vector<8x1024xf32>
    %29 = vector.shape_cast %22 : vector<8x1xf32> to vector<8x1xf32>
    %30 = vector.broadcast %29 : vector<8x1xf32> to vector<8x1024xf32>
    %31 = arith.select %20, %30, %28 : vector<8x1024xi1>, vector<8x1024xf32>
    %32 = arith.truncf %31 : vector<8x1024xf32> to vector<8x1024xbf16>
    %c256 = arith.constant 256 : index
    %c0_7 = arith.constant 0 : index
    %33 = vector.load %arg2[%c256, %c0_7] : memref<1408x128xbf16, #tpu.memory_space<vmem>>, vector<1024x128xbf16>
    %cst_8 = arith.constant dense<0.000000e+00> : vector<8x128xf32>
    %34 = tpu.matmul %32, %33, %cst_8 {dimension_numbers = #tpu.dot_dimension_numbers<[1], [0], [0], [1], [0, 0, 1, 1], [], []>} : vector<8x1024xbf16>, vector<1024x128xbf16>, vector<8x128xf32> -> vector<8x128xf32>
    %35 = arith.addf %15, %34 : vector<8x128xf32>
    %36 = vector.extract_strided_slice %0 {offsets = [0, 3], sizes = [8, 1], strides = [1, 1]} : vector<8x8xf32> to vector<8x1xf32>
    %37 = arith.fptosi %36 : vector<8x1xf32> to vector<8x1xi32>
    %38 = tpu.iota {dimensions = array<i32: 1>} : vector<8x128xi32>
    %39 = vector.broadcast %37 : vector<8x1xi32> to vector<8x128xi32>
    %40 = arith.cmpi eq, %38, %39 : vector<8x128xi32>
    %cst_9 = arith.constant 1.000000e+00 : f32
    %cst_10 = arith.constant 0.000000e+00 : f32
    %41 = vector.broadcast %cst_9 : f32 to vector<8x128xf32>
    %42 = vector.broadcast %cst_10 : f32 to vector<8x128xf32>
    %43 = arith.select %40, %41, %42 : vector<8x128xi1>, vector<8x128xf32>
    %44 = arith.truncf %43 : vector<8x128xf32> to vector<8x128xbf16>
    %c1280 = arith.constant 1280 : index
    %c0_11 = arith.constant 0 : index
    %45 = vector.load %arg2[%c1280, %c0_11] : memref<1408x128xbf16, #tpu.memory_space<vmem>>, vector<128x128xbf16>
    %cst_12 = arith.constant dense<0.000000e+00> : vector<8x128xf32>
    %46 = tpu.matmul %44, %45, %cst_12 {dimension_numbers = #tpu.dot_dimension_numbers<[1], [0], [0], [1], [0, 0, 1, 1], [], []>} : vector<8x128xbf16>, vector<128x128xbf16>, vector<8x128xf32> -> vector<8x128xf32>
    %47 = arith.addf %35, %46 : vector<8x128xf32>
    %c0_13 = arith.constant 0 : index
    %c0_14 = arith.constant 0 : index
    %48 = vector.load %arg3[%c0_13, %c0_14] : memref<8x128xbf16, #tpu.memory_space<vmem>>, vector<1x128xbf16>
    %49 = arith.extf %48 : vector<1x128xbf16> to vector<1x128xf32>
    %c1 = arith.constant 1 : index
    %c0_15 = arith.constant 0 : index
    %50 = vector.load %arg3[%c1, %c0_15] : memref<8x128xbf16, #tpu.memory_space<vmem>>, vector<1x128xbf16>
    %51 = arith.extf %50 : vector<1x128xbf16> to vector<1x128xf32>
    %52 = arith.subf %51, %49 : vector<1x128xf32>
    %53 = vector.broadcast %1 : vector<8x1xf32> to vector<8x128xf32>
    %54 = vector.broadcast %52 : vector<1x128xf32> to vector<8x128xf32>
    %55 = arith.mulf %53, %54 : vector<8x128xf32>
    %56 = vector.broadcast %49 : vector<1x128xf32> to vector<8x128xf32>
    %57 = arith.addf %56, %55 : vector<8x128xf32>
    %58 = arith.addf %47, %57 : vector<8x128xf32>
    %c0_16 = arith.constant 0 : index
    %c0_17 = arith.constant 0 : index
    %59 = vector.load %arg4[%c0_16, %c0_17] : memref<8x128xf32, #tpu.memory_space<vmem>>, vector<8x128xf32>
    tpu.vector_store %arg4[%c0_16, %c0_17], %58 {strides = array<i32>} : memref<8x128xf32, #tpu.memory_space<vmem>>, vector<8x128xf32>,
    return
  }
  func.func @transform_0(%arg0: i32) -> (i32, i32) {
    %c0_i32 = arith.constant 0 : i32
    %c0_i32_0 = arith.constant 0 : i32
    return %arg0, %c0_i32 : i32, i32
  }
  func.func @transform_1(%arg0: i32) -> (i32, i32) {
    %c0_i32 = arith.constant 0 : i32
    %c0_i32_0 = arith.constant 0 : i32
    %c0_i32_1 = arith.constant 0 : i32
    return %c0_i32, %c0_i32_0 : i32, i32
  }
  func.func @transform_2(%arg0: i32) -> (i32, i32) {
    %c0_i32 = arith.constant 0 : i32
    %c0_i32_0 = arith.constant 0 : i32
    %c0_i32_1 = arith.constant 0 : i32
    return %c0_i32, %c0_i32_0 : i32, i32
  }
  func.func @transform_3(%arg0: i32) -> (i32, i32) {
    %c0_i32 = arith.constant 0 : i32
    %c0_i32_0 = arith.constant 0 : i32
    return %arg0, %c0_i32 : i32, i32
  }
}

module attributes {stable_mosaic.version = 11 : i64} {
  func.func @_number_emb_kernel(%arg0: i32, %arg1: memref<8x8xf32, #tpu.memory_space<vmem>>, %arg2: memref<1408x128xbf16, #tpu.memory_space<vmem>>, %arg3: memref<8x128xbf16, #tpu.memory_space<vmem>>, %arg4: memref<8x128xf32, #tpu.memory_space<vmem>>) attributes {dimension_semantics = [#tpu.dimension_semantics<parallel>], iteration_bounds = array<i64: 2>, scalar_prefetch = 0 : i64, scratch_operands = 0 : i64, tpu.core_type = #tpu.core_type<tc>, window_params = [{transform_indices = @transform_0, window_bounds = array<i64: 8, 8>}, {pipeline_mode = #tpu.pipeline_mode<synchronous>, transform_indices = @transform_1, window_bounds = array<i64: 1408, 128>}, {pipeline_mode = #tpu.pipeline_mode<synchronous>, transform_indices = @transform_2, window_bounds = array<i64: 8, 128>}, {transform_indices = @transform_3, window_bounds = array<i64: 8, 128>}]} {
    %c0 = arith.constant 0 : index
    %c0_0 = arith.constant 0 : index
    %0 = vector.load %arg1[%c0, %c0_0] : memref<8x8xf32, #tpu.memory_space<vmem>>, vector<8x8xf32>
    %1 = vector.extract_strided_slice %0 {offsets = [0, 0], sizes = [8, 1], strides = [1, 1]} : vector<8x8xf32> to vector<8x1xf32>
    %2 = vector.extract_strided_slice %0 {offsets = [0, 1], sizes = [8, 1], strides = [1, 1]} : vector<8x8xf32> to vector<8x1xf32>
    %3 = arith.fptosi %2 : vector<8x1xf32> to vector<8x1xi32>
    %4 = vector.extract_strided_slice %0 {offsets = [0, 2], sizes = [8, 1], strides = [1, 1]} : vector<8x8xf32> to vector<8x1xf32>
    %5 = arith.fptosi %4 : vector<8x1xf32> to vector<8x1xi32>
    %6 = vector.extract_strided_slice %0 {offsets = [0, 4], sizes = [8, 1], strides = [1, 1]} : vector<8x8xf32> to vector<8x1xf32>
    %7 = tpu.iota {dimensions = array<i32: 1>} : vector<8x256xi32>
    %8 = vector.broadcast %3 : vector<8x1xi32> to vector<8x256xi32>
    %9 = arith.cmpi eq, %7, %8 : vector<8x256xi32>
    %cst = arith.constant 1.000000e+00 : f32
    %cst_1 = arith.constant 0.000000e+00 : f32
    %10 = vector.broadcast %cst : f32 to vector<8x256xf32>
    %11 = vector.broadcast %cst_1 : f32 to vector<8x256xf32>
    %12 = arith.select %9, %10, %11 : vector<8x256xi1>, vector<8x256xf32>
    %13 = arith.truncf %12 : vector<8x256xf32> to vector<8x256xbf16>
    %c0_2 = arith.constant 0 : index
    %c0_3 = arith.constant 0 : index
    %14 = vector.load %arg2[%c0_2, %c0_3] : memref<1408x128xbf16, #tpu.memory_space<vmem>>, vector<256x128xbf16>
    %cst_4 = arith.constant dense<0.000000e+00> : vector<8x128xf32>
    %15 = tpu.matmul %13, %14, %cst_4 {dimension_numbers = #tpu.dot_dimension_numbers<[1], [0], [0], [1], [0, 0, 1, 1], [], []>} : vector<8x256xbf16>, vector<256x128xbf16>, vector<8x128xf32> -> vector<8x128xf32>
    %16 = tpu.iota {dimensions = array<i32: 1>} : vector<8x1024xi32>
    %17 = vector.broadcast %5 : vector<8x1xi32> to vector<8x1024xi32>
    %18 = arith.subi %16, %17 : vector<8x1024xi32>
    %c0_i32 = arith.constant 0 : i32
    %19 = vector.broadcast %c0_i32 : i32 to vector<8x1024xi32>
    %20 = arith.cmpi eq, %18, %19 : vector<8x1024xi32>
    %cst_5 = arith.constant 1.000000e+00 : f32
    %21 = vector.broadcast %cst_5 : f32 to vector<8x1xf32>
    %22 = arith.subf %21, %6 : vector<8x1xf32>
    %c1_i32 = arith.constant 1 : i32
    %23 = vector.broadcast %c1_i32 : i32 to vector<8x1024xi32>
    %24 = arith.cmpi eq, %18, %23 : vector<8x1024xi32>
    %cst_6 = arith.constant 0.000000e+00 : f32
    %25 = vector.shape_cast %6 : vector<8x1xf32> to vector<8x1xf32>
    %26 = vector.broadcast %25 : vector<8x1xf32> to vector<8x1024xf32>
    %27 = vector.broadcast %cst_6 : f32 to vector<8x1024xf32>
    %28 = arith.select %24, %26, %27 : vector<8x1024xi1>, vector<8x1024xf32>
    %29 = vector.shape_cast %22 : vector<8x1xf32> to vector<8x1xf32>
    %30 = vector.broadcast %29 : vector<8x1xf32> to vector<8x1024xf32>
    %31 = arith.select %20, %30, %28 : vector<8x1024xi1>, vector<8x1024xf32>
    %32 = arith.truncf %31 : vector<8x1024xf32> to vector<8x1024xbf16>
    %c256 = arith.constant 256 : index
    %c0_7 = arith.constant 0 : index
    %33 = vector.load %arg2[%c256, %c0_7] : memref<1408x128xbf16, #tpu.memory_space<vmem>>, vector<1024x128xbf16>
    %cst_8 = arith.constant dense<0.000000e+00> : vector<8x128xf32>
    %34 = tpu.matmul %32, %33, %cst_8 {dimension_numbers = #tpu.dot_dimension_numbers<[1], [0], [0], [1], [0, 0, 1, 1], [], []>} : vector<8x1024xbf16>, vector<1024x128xbf16>, vector<8x128xf32> -> vector<8x128xf32>
    %35 = arith.addf %15, %34 : vector<8x128xf32>
    %36 = vector.extract_strided_slice %0 {offsets = [0, 3], sizes = [8, 1], strides = [1, 1]} : vector<8x8xf32> to vector<8x1xf32>
    %37 = arith.fptosi %36 : vector<8x1xf32> to vector<8x1xi32>
    %38 = tpu.iota {dimensions = array<i32: 1>} : vector<8x128xi32>
    %39 = vector.broadcast %37 : vector<8x1xi32> to vector<8x128xi32>
    %40 = arith.cmpi eq, %38, %39 : vector<8x128xi32>
    %cst_9 = arith.constant 1.000000e+00 : f32
    %cst_10 = arith.constant 0.000000e+00 : f32
    %41 = vector.broadcast %cst_9 : f32 to vector<8x128xf32>
    %42 = vector.broadcast %cst_10 : f32 to vector<8x128xf32>
    %43 = arith.select %40, %41, %42 : vector<8x128xi1>, vector<8x128xf32>
    %44 = arith.truncf %43 : vector<8x128xf32> to vector<8x128xbf16>
    %c1280 = arith.constant 1280 : index
    %c0_11 = arith.constant 0 : index
    %45 = vector.load %arg2[%c1280, %c0_11] : memref<1408x128xbf16, #tpu.memory_space<vmem>>, vector<128x128xbf16>
    %cst_12 = arith.constant dense<0.000000e+00> : vector<8x128xf32>
    %46 = tpu.matmul %44, %45, %cst_12 {dimension_numbers = #tpu.dot_dimension_numbers<[1], [0], [0], [1], [0, 0, 1, 1], [], []>} : vector<8x128xbf16>, vector<128x128xbf16>, vector<8x128xf32> -> vector<8x128xf32>
    %47 = arith.addf %35, %46 : vector<8x128xf32>
    %c0_13 = arith.constant 0 : index
    %c0_14 = arith.constant 0 : index
    %48 = vector.load %arg3[%c0_13, %c0_14] : memref<8x128xbf16, #tpu.memory_space<vmem>>, vector<1x128xbf16>
    %49 = arith.extf %48 : vector<1x128xbf16> to vector<1x128xf32>
    %c1 = arith.constant 1 : index
    %c0_15 = arith.constant 0 : index
    %50 = vector.load %arg3[%c1, %c0_15] : memref<8x128xbf16, #tpu.memory_space<vmem>>, vector<1x128xbf16>
    %51 = arith.extf %50 : vector<1x128xbf16> to vector<1x128xf32>
    %52 = arith.subf %51, %49 : vector<1x128xf32>
    %53 = vector.broadcast %1 : vector<8x1xf32> to vector<8x128xf32>
    %54 = vector.broadcast %52 : vector<1x128xf32> to vector<8x128xf32>
    %55 = arith.mulf %53, %54 : vector<8x128xf32>
    %56 = vector.broadcast %49 : vector<1x128xf32> to vector<8x128xf32>
    %57 = arith.addf %56, %55 : vector<8x128xf32>
    %58 = arith.addf %47, %57 : vector<8x128xf32>
    %c0_16 = arith.constant 0 : index
    %c0_17 = arith.constant 0 : index
    %59 = vector.load %arg4[%c0_16, %c0_17] : memref<8x128xf32, #tpu.memory_space<vmem>>, vector<8x128xf32>
    tpu.vector_store %arg4[%c0_16, %c0_17], %58 {strides = array<i32>} : memref<8x128xf32, #tpu.memory_space<vmem>>, vector<8x128xf32>,
    return
  }
  func.func @transform_0(%arg0: i32) -> (i32, i32) {
    %c0_i32 = arith.constant 0 : i32
    %c0_i32_0 = arith.constant 0 : i32
    return %arg0, %c0_i32 : i32, i32
  }
  func.func @transform_1(%arg0: i32) -> (i32, i32) {
    %c0_i32 = arith.constant 0 : i32
    %c0_i32_0 = arith.constant 0 : i32
    %c0_i32_1 = arith.constant 0 : i32
    return %c0_i32, %c0_i32_0 : i32, i32
  }
  func.func @transform_2(%arg0: i32) -> (i32, i32) {
    %c0_i32 = arith.constant 0 : i32
    %c0_i32_0 = arith.constant 0 : i32
    %c0_i32_1 = arith.constant 0 : i32
    return %c0_i32, %c0_i32_0 : i32, i32
  }
  func.func @transform_3(%arg0: i32) -> (i32, i32) {
    %c0_i32 = arith.constant 0 : i32
    %c0_i32_0 = arith.constant 0 : i32
    return %arg0, %c0_i32 : i32, i32
  }
}

</mosaic_0001>

<bundles_post_ra>
// kernel: tpu_custom_call.1
= control target key start
LH: loop header
LB: loop body
LE: loop exit
PB: predicated region body
PF: predicated region fallthrough
CT: control target
= control target key end

     0   :  { %8 = vsyncpa [#allocation3], 0  ;;  %s2021_s0 = inlined_call_operand.vmem [shape: f32[16,8], index: 0, kind: input, shape index: {}]   ;;  %s2022_s1 = inlined_call_operand.hbm [shape: bf16[1408,128], index: 1, kind: input, shape index: {}]   ;;  %s2023_s2 = inlined_call_operand.vmem [shape: bf16[8,128], index: 2, kind: input, shape index: {}]   ;;  %s2024_s3 = inlined_call_operand.hbm [shape: f32[16,128], index: 3, kind: output, shape index: {}]  }
   0x1   :  { %9 = vsyncpa [#allocation4], 0 }
   0x2   :  { %11 = vsyncpa [#allocation4 + $0x1], 0  ;;  %s1852_s12 = smov 0   ;;  %s1854_s13 = smov 0  }
   0x3   :  { %s1856_s14 = smov 0   ;;  %s1858_s15 = smov 0  }
   0x4 LB: > { %s1873_s16 = sadd.s32 4294967295, %s1818_s15   ;;  %s1322_s17 = sadd.s32 4294967294, %s1818_s15   ;;  %s1818_s15 = sphi %s1858_s15, %s2032_s15   ;;  %s1814_s14 = sphi %s1856_s14, %s2031_s14   ;;  %s1810_s13 = sphi %s1854_s13, %s2030_s13   ;;  %s1806_s12 = sphi %s1852_s12, %s2029_s12  }
   0x5   : > { %s1877_s18 = sadd.s32 1, %s1818_s15   ;;  %s92_s19 = sadd.s32 1, %s1814_s14 }
   0x6   : > { %s89_s20 = ssub.s32 %s1818_s15, %s1877_s18  ;;  %p102_p0 = scmp.ne.s32.totalorder %s1814_s14, %s1810_s13 }
   0x7   : > { %p90_p1 = scmp.eq.s32.totalorder %s89_s20, 0  ;;  %p103_p2 = scmp.eq.s32.totalorder %s1873_s16, 1 }
   0x8   : > { %p108_p3 = scmp.ne.s32.totalorder %s1810_s13, %s1806_s12  ;;  %p109_p4 = scmp.eq.s32.totalorder %s1322_s17, 1 }
   0x9   : > { %s1888_s21 = scalar_select %p90_p1, %s1814_s14, %s92_s19  }
   0xa   : > { %p1890_p5 = por %p103_p2, %p102_p0  ;;  %p1894_p6 = por %p109_p4, %p108_p3 }
   0xb   : > { %p1323_p7 = scmp.ge.s32.totalorder %s1818_s15, 1  ;;  %p116_p8 = scmp.lt.s32.totalorder %s1818_s15, 3 }
   0xc   : > { %s2026_s23 = scalar_select %p1894_p6, 1, 0 }
   0xd   : > { %p1583_p9 = scmp.eq.s32.totalorder %s1873_s16, 0  ;;  %p1901_p10 = pnand %p1323_p7, %p116_p8 }
   0xe   : > { %s1820_s25 = smov [#allocation2]  }
   0xf   : > { %s128_s26 = sshll.u32 %s1820_s25, 4  ;;  %p1575_p11 = pneg %p1901_p10  ;;  %s129_s26 = int_to_ptr.vmem [resolvable:$true] %s128_s26 }
  0x10   : > { %s1739_s27 = scalar_lea.vmem %s129_s26, 11264  ;;  %p1747_p3 = scmp.lt.s32.totalorder %s129_s26, %s129_s26 }
  0x11   : > { %p1576_p12 = pnand %p1583_p9, %p1575_p11  ;;  %p1740_p0 = scmp.ne.s32.totalorder %s129_s26, %s1739_s27 }
  0x12   : > { %p1748_p4 = scmp.lt.s32.totalorder %s1739_s27, %s1739_s27 }
  0x13   : > { %p1730_p13 = pneg %p1576_p12 }
  0x14   : > { %p1749_p6 = por %p1748_p4, %p1747_p3 }
  0x15   : > { %p1742_p1 = pnand %p1740_p0, %p1730_p13 }
  0x17   : > { %p1743_p2 = pneg %p1742_p1 }
  0x19   : > { %p1750_p7 = pnand %p1749_p6, %p1743_p2 }
  0x1b   : > { %1753 = shalt.err (!%p1750_p7)
}
  0x1c   : > { %s1821_s28 = smov 64   ;;  %s1822_s29 = smov 4  }
  0x1d   : > { %1578 = dma.hbm_to_vmem [thread:$0]  (!%p1576_p12), %s2022_s1, 11264, %s129_s26, [#allocation3], %s1821_s28, %s1821_s28, %s1822_s29  }
  0x1e   : > { %154 = sbr.rel (%p1901_p10) target bundleno = 463 (0x1cf), region = 32 }
  0x23   : > { %1797 = dma.done.wait (%p1583_p9), [#allocation3], 11264  }
  0x24   : > { %1799 = vsyncadd (%p1583_p9), [#allocation3], 4294956032  ;;  %p177_p8 = scmp.lt.s32.totalorder %s1873_s16, 1  ;;  %v1823_v0 = vmov 2   ;;  %v1824_v1 = vmov 1   ;;  %v1640_v4 = vld [vmem:[#allocation2 + $0xf8] sm:$0xff]   ;;  %v184_v44 = vlaneseq }
  0x25   : > { %1629 = vset.pattern.permute.xlu0 %v1823_v0  ;;  %1636 = vset.pattern.permute.xlu1 %v1824_v1  ;;  %v1641_v6 = vld [vmem:[#allocation2 + $0x178] sm:$0xff]   ;;  %v1644_v10 = vld [vmem:[#allocation2 + $0xf0] sm:$0xff]   ;;  %v1825_v15 = vmov 4   ;;  %v1826_v16 = vmov 3   ;;  %v1648_v17 = vld [vmem:[#allocation2 + $0xe8] sm:$0xff]   ;;  %v1827_v43 = vmov 0  }
  0x26   : > { %s178_s5 = scalar_select %p177_p8, %s1873_s16, 1  ;;  %1428 = vmatprep.subr.bf16.mxu0 %v1640_v4  ;;  %v1642_v8 = vld [vmem:[#allocation2 + $0xb8] sm:$0xff]   ;;  %1450 = vmatprep.subr.bf16.mxu1 %v1641_v6  ;;  %v1645_v12 = vld [vmem:[#allocation2 + $0x170] sm:$0xff]   ;;  %v1649_v18 = vld [vmem:[#allocation2 + $0x168] sm:$0xff]   ;;  %v1930_v45 = vand.u32 127, %v184_v44 }
  0x27   : > { %v1643_v9 = vld [vmem:[#allocation2 + $0x138] sm:$0xff]   ;;  %1429 = vmatpush3.bf16.msra.mxu0 %v1642_v8  ;;  %v1646_v13 = vld [vmem:[#allocation2 + $0xb0] sm:$0xff]   ;;  %v1650_v19 = vld [vmem:[#allocation2 + $0xa8] sm:$0xff]   ;;  %s174_s17 = sand.u32 1, %s1810_s13   ;;  %s1425_s20 = sshll.u32 %s1873_s16, 7 }
  0x28   : > { %s1329_s6 = sshll.u32 %s178_s5, 3  ;;  %1451 = vmatpush3.bf16.msra.mxu1 %v1643_v9  ;;  %1430 = vmatprep.subr.bf16.mxu0 %v1644_v10  ;;  %v1647_v14 = vld [vmem:[#allocation2 + $0x130] sm:$0xff]   ;;  %v1651_v20 = vld [vmem:[#allocation2 + $0x128] sm:$0xff]   ;;  %v1652_v21 = vld [vmem:[#allocation2 + $0xe0] sm:$0xff]   ;;  %v1933_v46 = vadd.s32 128, %v1930_v45  ;;  %v229_v47 = vadd.s32 384, %v1930_v45  ;;  %s1249_s28 = scalar_lea.hbm %s2024_s3, %s1425_s20 }
  0x29   : > { %s180_s9 = scalar_lea.vmem %s2021_s0, %s1329_s6  ;;  %1452 = vmatprep.subr.bf16.mxu1 %v1645_v12  ;;  %v1653_v22 = vld [vmem:[#allocation2 + $0x160] sm:$0xff]   ;;  %v1656_v25 = vld [vmem:[#allocation2 + $0xd8] sm:$0xff]   ;;  %v1660_v29 = vld [vmem:[#allocation2 + $0xd0] sm:$0xff]   ;;  %v228_v48 = vadd.s32 256, %v1930_v45  ;;  %v231_v49 = vadd.s32 640, %v1930_v45  ;;  %v233_v50 = vadd.s32 896, %v1930_v45 }
  0x2a   : > { %v1923_v2 = vld [vmem:[%s180_s9] sm:$0xff]  ;;  %v1657_v26 = vld [vmem:[#allocation2 + $0x158] sm:$0xff]   ;;  %v1661_v30 = vld [vmem:[#allocation2 + $0x150] sm:$0xff]   ;;  %s1328_s19 = sshll.u32 %s174_s17, 3  ;;  %s1238_s29 = scalar_lea.sflag [#allocation4], %s174_s17 }
  0x2b   : > { %v1567_v3 = vtrunc.f32 %v1923_v2  ;;  %v253_v5 = vsub.f32 1.0, %v1923_v2  ;;  %1431 = vmatpush3.bf16.msra.mxu0 %v1646_v13  ;;  %v1654_v23 = vld [vmem:[#allocation2 + $0xa0] sm:$0xff]   ;;  %v1658_v27 = vld [vmem:[#allocation2 + $0x98] sm:$0xff]   ;;  %v1662_v31 = vld [vmem:[#allocation2 + $0x90] sm:$0xff]   ;;  %s176_s24 = scalar_lea.vmem [#allocation5], %s1328_s19  ;;  %s1831_s4 = smov [#allocation5]  }
  0x2c   : > { %1453 = vmatpush3.bf16.msra.mxu1 %v1647_v14  ;;  %1432 = vmatprep.subr.bf16.mxu0 %v1648_v17  ;;  %v1655_v24 = vld [vmem:[#allocation2 + $0x120] sm:$0xff]   ;;  %v1659_v28 = vld [vmem:[#allocation2 + $0x118] sm:$0xff]   ;;  %v1663_v32 = vld [vmem:[#allocation2 + $0x110] sm:$0xff]   ;;  %s1251_s25 = sshll.u32 %s176_s24, 4  ;;  %s1758_s5 = sshll.u32 %s1831_s4, 4  ;;  %s1252_s25 = int_to_ptr.vmem [resolvable:$true] %s1251_s25  ;;  %s1759_s5 = int_to_ptr.vmem [resolvable:$false] %s1758_s5 }
  0x2d   : > { %v1568_v7 = vcvt.f32.s32 %v1567_v3  ;;  %v1631_v11 = vpack.i.bf16 %v253_v5, %v1923_v2  ;;  %1454 = vmatprep.subr.bf16.mxu1 %v1649_v18  ;;  %v1664_v33 = vld [vmem:[#allocation2 + $0xc8] sm:$0xff]   ;;  %v1668_v37 = vld [vmem:[#allocation2 + $0xc0] sm:$0xff]   ;;  %v1672_v41 = vld [vmem:[#allocation2 + $0x1f8] sm:$0xff]   ;;  %s1754_s30 = scalar_lea.vmem %s1252_s25, 128  ;;  %s1760_s16 = scalar_lea.vmem %s1759_s5, 256 }
  0x2e   : > { %v1665_v34 = vld [vmem:[#allocation2 + $0x148] sm:$0xff]   ;;  %v1669_v38 = vld [vmem:[#allocation2 + $0x140] sm:$0xff]   ;;  %v1673_v42 = vld [vmem:[#allocation2 + $0x278] sm:$0xff]   ;;  %p1755_p6 = scmp.ne.s32.totalorder %s1252_s25, %s1754_s30  ;;  %p1761_p11 = scmp.lt.s32.totalorder %s1252_s25, %s1759_s5 }
  0x2f   : > { %235 = vperm.xlu0 %1629, %v1568_v7   ;;  %188 = vperm.xlu1 %1636, %v1568_v7   ;;  %v1666_v35 = vld [vmem:[#allocation2 + $0x88] sm:$0xff]   ;;  %v1670_v39 = vld [vmem:[#allocation2 + $0x80] sm:$0xff]   ;;  %v1674_v9 = vld [vmem:[#allocation2 + $0x1b8] sm:$0xff]   ;;  %p1762_p12 = scmp.lt.s32.totalorder %s1760_s16, %s1754_s30 }
  0x30   : > { %1433 = vmatpush3.bf16.msra.mxu0 %v1650_v19  ;;  %1455 = vmatpush3.bf16.msra.mxu1 %v1651_v20  ;;  %v1667_v36 = vld [vmem:[#allocation2 + $0x108] sm:$0xff]   ;;  %v1671_v40 = vld [vmem:[#allocation2 + $0x100] sm:$0xff]   ;;  %v1675_v10 = vld [vmem:[#allocation2 + $0x238] sm:$0xff]   ;;  %p1756_p9 = pnand %p1755_p6, %p1890_p5 }
  0x31   : > { %1434 = vmatprep.subr.bf16.mxu0 %v1652_v21  ;;  %1456 = vmatprep.subr.bf16.mxu1 %v1653_v22  ;;  %v1678_v19 = vld [vmem:[#allocation2 + $0x1b0] sm:$0xff]   ;;  %v1680_v21 = vld [vmem:[#allocation2 + $0x1e8] sm:$0xff]   ;;  %p1763_p13 = por %p1762_p12, %p1761_p11 }
  0x32   : > { %v1679_v20 = vld [vmem:[#allocation2 + $0x230] sm:$0xff]   ;;  %v1681_v22 = vld [vmem:[#allocation2 + $0x268] sm:$0xff]   ;;  %p1757_p10 = pneg %p1756_p9 }
  0x33   : > { %1630 = vset.pattern.permute.xlu0 %v1825_v15  ;;  %1637 = vset.pattern.permute.xlu1 %v1826_v16  ;;  %v1676_v15 = vld [vmem:[#allocation2 + $0x1f0] sm:$0xff]  }
  0x34   : > { %1632 = vperm.xlu0 %1630, %v1631_v11   ;;  %1105 = vperm.xlu1 %1637, %v1568_v7   ;;  %v1677_v16 = vld [vmem:[#allocation2 + $0x270] sm:$0xff]   ;;  %p1764_p0 = pnand %p1763_p13, %p1757_p10 }
  0x35   : > { %1435 = vmatpush3.bf16.msra.mxu0 %v1654_v23  ;;  %1457 = vmatpush3.bf16.msra.mxu1 %v1655_v24  ;;  %v1682_v23 = vld [vmem:[#allocation2 + $0x1a8] sm:$0xff]  }
  0x36   : > { %1436 = vmatprep.subr.bf16.mxu0 %v1656_v25  ;;  %1458 = vmatprep.subr.bf16.mxu1 %v1657_v26  ;;  %v1683_v24 = vld [vmem:[#allocation2 + $0x228] sm:$0xff]   ;;  %v1684_v25 = vld [vmem:[#allocation2 + $0x1e0] sm:$0xff]  }
  0x37   : > { %v1685_v26 = vld [vmem:[#allocation2 + $0x260] sm:$0xff]  }
  0x38   : > { %1638 = vset.pattern.permute.xlu1 %v1827_v43  ;;  %1639 = vset.pattern.permute.xlu0 %v1827_v43  ;;  %v1698_v43 = vld [vmem:[#allocation2 + $0x188] sm:$0xff]  }
  0x39   : > { %1437 = vmatpush3.bf16.msra.mxu0 %v1658_v27  ;;  %1459 = vmatpush3.bf16.msra.mxu1 %v1659_v28  ;;  %v1686_v27 = vld [vmem:[#allocation2 + $0x1a0] sm:$0xff]  }
  0x3a   : > { %1438 = vmatprep.subr.bf16.mxu0 %v1660_v29  ;;  %1460 = vmatprep.subr.bf16.mxu1 %v1661_v30  ;;  %v1687_v28 = vld [vmem:[#allocation2 + $0x220] sm:$0xff]   ;;  %v1688_v29 = vld [vmem:[#allocation2 + $0x1d8] sm:$0xff]  }
  0x3b   : > { %1222 = vperm.xlu1 %1638, %v1923_v2   ;;  %v1689_v30 = vld [vmem:[#allocation2 + $0x258] sm:$0xff]  }
  0x3d   : > { %1439 = vmatpush3.bf16.msra.mxu0 %v1662_v31  ;;  %1461 = vmatpush3.bf16.msra.mxu1 %v1663_v32  ;;  %v1690_v31 = vld [vmem:[#allocation2 + $0x198] sm:$0xff]  }
  0x3e   : > { %1440 = vmatprep.subr.bf16.mxu0 %v1664_v33  ;;  %1462 = vmatprep.subr.bf16.mxu1 %v1665_v34  ;;  %v1691_v32 = vld [vmem:[#allocation2 + $0x218] sm:$0xff]   ;;  %v1692_v33 = vld [vmem:[#allocation2 + $0x1d0] sm:$0xff]  }
  0x3f   : > { %v1693_v34 = vld [vmem:[#allocation2 + $0x250] sm:$0xff]  }
  0x41   : > { %1441 = vmatpush3.bf16.msra.mxu0 %v1666_v35  ;;  %1463 = vmatpush3.bf16.msra.mxu1 %v1667_v36  ;;  %v230_v35 = vadd.s32 512, %v1930_v45  ;;  %v232_v36 = vadd.s32 768, %v1930_v45 }
  0x42   : > { %1442 = vmatprep.subr.bf16.mxu0 %v1668_v37  ;;  %1464 = vmatprep.subr.bf16.mxu1 %v1669_v38  ;;  %v1694_v37 = vld [vmem:[#allocation2 + $0x190] sm:$0xff]  }
  0x43   : > { %v1695_v38 = vld [vmem:[#allocation2 + $0x210] sm:$0xff]  }
  0x45   : > { %1443 = vmatpush3.bf16.msra.mxu0 %v1670_v39  ;;  %1465 = vmatpush3.bf16.msra.mxu1 %v1671_v40  ;;  %v1696_v39 = vld [vmem:[#allocation2 + $0x1c8] sm:$0xff]  }
  0x46   : > { %1472 = vmatprep.subr.bf16.mxu0 %v1672_v41  ;;  %1494 = vmatprep.subr.bf16.mxu1 %v1673_v42  ;;  %v1697_v40 = vld [vmem:[#allocation2 + $0x248] sm:$0xff]  }
  0xaa   : > { %v1939_v51 = vpop.permute.xlu0 %235 }
  0xab   : > { %v238_v52 = vsub.s32 %v1933_v46, %v1939_v51  ;;  %v240_v53 = vsub.s32 %v229_v47, %v1939_v51  ;;  %v237_v54 = vsub.s32 %v1930_v45, %v1939_v51  ;;  %v239_v55 = vsub.s32 %v228_v48, %v1939_v51  ;;  %v1699_v47 = vld [vmem:[#allocation2 + $0x208] sm:$0xff]   ;;  %v1700_v48 = vld [vmem:[#allocation2 + $0x1c0] sm:$0xff]  }
  0xac   : > { %v242_v56 = vsub.s32 %v231_v49, %v1939_v51  ;;  %v244_v57 = vsub.s32 %v233_v50, %v1939_v51  ;;  %v241_v41 = vsub.s32 %v230_v35, %v1939_v51  ;;  %v243_v42 = vsub.s32 %v232_v36, %v1939_v51  ;;  %v1701_v49 = vld [vmem:[#allocation2 + $0x240] sm:$0xff]   ;;  %v1704_v51 = vld [vmem:[#allocation2 + $0x78] sm:$0xff]  }
  0xad   : > { %vm246_vm0 = vcmp.eq.s32.totalorder %v238_v52, 0  ;;  %vm255_vm1 = vcmp.eq.s32.totalorder %v238_v52, 1  ;;  %vm248_vm2 = vcmp.eq.s32.totalorder %v240_v53, 0  ;;  %vm257_vm3 = vcmp.eq.s32.totalorder %v240_v53, 1  ;;  %v1702_v53 = vld [vmem:[#allocation2 + $0x180] sm:$0xff]  }
  0xae   : > { %vm245_vm4 = vcmp.eq.s32.totalorder %v237_v54, 0  ;;  %vm254_vm5 = vcmp.eq.s32.totalorder %v237_v54, 1  ;;  %vm247_vm6 = vcmp.eq.s32.totalorder %v239_v55, 0  ;;  %vm256_vm7 = vcmp.eq.s32.totalorder %v239_v55, 1  ;;  %v1703_v54 = vld [vmem:[#allocation2 + $0x200] sm:$0xff]  }
  0xaf   : > { %v1633_v58 = vpop.permute.xlu0 %1632  ;;  %vm259_vm8 = vcmp.eq.s32.totalorder %v242_v56, 1  ;;  %vm261_vm9 = vcmp.eq.s32.totalorder %v244_v57, 1  ;;  %vm250_vm10 = vcmp.eq.s32.totalorder %v242_v56, 0  ;;  %vm252_vm11 = vcmp.eq.s32.totalorder %v244_v57, 0  ;;  %v1976_v57 = vpop.permute.xlu1 %188  ;;  %v1215_v36 = vld [vmem:[%s2023_s2] sm:$0x1] }
  0xb0   : > { %v1949_v59 = vunpack.i.h.bf16 %v1633_v58  ;;  %v1951_v60 = vunpack.i.l.bf16 %v1633_v58  ;;  %vm258_vm12 = vcmp.eq.s32.totalorder %v241_v41, 1  ;;  %vm260_vm13 = vcmp.eq.s32.totalorder %v243_v42, 1  ;;  %v1705_v58 = vld [vmem:[#allocation2 + $0x38] sm:$0xff]  }
  0xb1   : > { %vm249_vm14 = vcmp.eq.s32.totalorder %v241_v41, 0  ;;  %vm251_vm15 = vcmp.eq.s32.totalorder %v243_v42, 0 }
  0xb2   : > { %v268_v61 = vsel %vm255_vm1, %v1951_v60, 0.0  ;;  %v270_v62 = vsel %vm257_vm3, %v1951_v60, 0.0  ;;  %v267_v63 = vsel %vm254_vm5, %v1951_v60, 0.0  ;;  %v269_v0 = vsel %vm256_vm7, %v1951_v60, 0.0 }
  0xb3   : > { %v281_v1 = vsel %vm246_vm0, %v1949_v59, %v268_v61  ;;  %v283_v2 = vsel %vm248_vm2, %v1949_v59, %v270_v62  ;;  %v280_v3 = vsel %vm245_vm4, %v1949_v59, %v267_v63  ;;  %v282_v4 = vsel %vm247_vm6, %v1949_v59, %v269_v0  ;;  %v1706_v61 = vld [vmem:[#allocation2 + $0x2b8] sm:$0xff]   ;;  %v1707_v0 = vld [vmem:[#allocation2 + $0x70] sm:$0xff]  }
  0xb4   : > { %v289_v5 = vpack.c.bf16 %v281_v1, %v281_v1  ;;  %v291_v6 = vpack.c.bf16 %v283_v2, %v283_v2  ;;  %v288_v7 = vpack.c.bf16 %v280_v3, %v280_v3  ;;  %v290_v8 = vpack.c.bf16 %v282_v4, %v282_v4  ;;  %v1709_v1 = vld [vmem:[#allocation2 + $0x2b0] sm:$0xff]   ;;  %v1710_v2 = vld [vmem:[#allocation2 + $0x68] sm:$0xff]  }
  0xb5   : > { %v272_v11 = vsel %vm259_vm8, %v1951_v60, 0.0  ;;  %v274_v12 = vsel %vm261_vm9, %v1951_v60, 0.0  ;;  %v271_v50 = vsel %vm258_vm12, %v1951_v60, 0.0  ;;  %v273_v52 = vsel %vm260_vm13, %v1951_v60, 0.0  ;;  %v1712_v4 = vld [vmem:[#allocation2 + $0x2a8] sm:$0xff]  }
  0xb6   : > { %840 = vmatprep.mubr.bf16.mxu0 %v289_v5  ;;  %880 = vmatprep.mubr.bf16.mxu1 %v291_v6  ;;  %v285_v13 = vsel %vm250_vm10, %v1949_v59, %v272_v11  ;;  %v287_v14 = vsel %vm252_vm11, %v1949_v59, %v274_v12  ;;  %v284_v55 = vsel %vm249_vm14, %v1949_v59, %v271_v50  ;;  %v1828_v63 = vmov 0.0   ;;  %v1713_v5 = vld [vmem:[#allocation2 + $0x60] sm:$0xff]   ;;  %v1719_v11 = vld [vmem:[#allocation2 + $0x50] sm:$0xff]  }
  0xb7   : > { %841 = vmatmul.mubr.bf16.vlgmr.msra.gmra.mxu0 %v288_v7  ;;  %881 = vmatmul.mubr.bf16.vlgmr.msra.gmra.mxu1 %v290_v8  ;;  %v293_v17 = vpack.c.bf16 %v285_v13, %v285_v13  ;;  %v295_v18 = vpack.c.bf16 %v287_v14, %v287_v14  ;;  %v286_v56 = vsel %vm251_vm15, %v1949_v59, %v273_v52  ;;  %v1708_v59 = vld [vmem:[#allocation2 + $0x30] sm:$0xff]   ;;  %v1829_v3 = vmov 1.0|1.0   ;;  %v1714_v6 = vld [vmem:[#allocation2 + $0x20] sm:$0xff]   ;;  %v1716_v8 = vld [vmem:[#allocation2 + $0x58] sm:$0xff]  }
  0xb8   : > { %1473 = vmatpush3.bf16.msra.mxu0 %v1674_v9  ;;  %1495 = vmatpush3.bf16.msra.mxu1 %v1675_v10  ;;  %vm191_vm0 = vcmp.eq.s32.totalorder %v1933_v46, %v1976_v57  ;;  %v292_v60 = vpack.c.bf16 %v284_v55, %v284_v55  ;;  %v294_v62 = vpack.c.bf16 %v286_v56, %v286_v56  ;;  %vm1830_vm2 = vmmov 0   ;;  %v1711_v46 = vld [vmem:[#allocation2 + $0x28] sm:$0xff]   ;;  %v1715_v7 = vld [vmem:[#allocation2 + $0x2a0] sm:$0xff]   ;;  %v1717_v9 = vld [vmem:[#allocation2 + $0x18] sm:$0xff]  }
  0xb9   : > { %920 = vmatprep.mubr.bf16.mxu0 %v293_v17  ;;  %960 = vmatprep.mubr.bf16.mxu1 %v295_v18  ;;  %vm1410_vm1 = vmpackc.low %vm191_vm0, %vm191_vm0  ;;  %v1718_v10 = vld [vmem:[#allocation2 + $0x298] sm:$0xff]   ;;  %v1720_v12 = vld [vmem:[#allocation2 + $0x10] sm:$0xff]   ;;  %v1106_v18 = vpop.permute.xlu1 %1105  ;;  %vm190_vm3 = vcmp.eq.s32.totalorder %v1930_v45, %v1976_v57 }
  0xba   : > { %1474 = vmatprep.subr.bf16.mxu0 %v1676_v15  ;;  %1496 = vmatprep.subr.bf16.mxu1 %v1677_v16  ;;  %v1721_v13 = vld [vmem:[#allocation2 + $0x290] sm:$0xff]   ;;  %v1722_v14 = vld [vmem:[#allocation2 + $0x48] sm:$0xff]   ;;  %v1725_v17 = vld [vmem:[#allocation2 + $0x40] sm:$0xff]   ;;  %vm1107_vm4 = vcmp.eq.s32.totalorder %v1930_v45, %v1106_v18 }
  0xbb   : > { %v1723_v15 = vld [vmem:[#allocation2 + $0x8] sm:$0xff]   ;;  %vm1412_vm5 = vmpackc.low %vm190_vm3, %vm190_vm3 }
  0xbc   : > { %1475 = vmatpush3.bf16.msra.mxu0 %v1678_v19  ;;  %1497 = vmatpush3.bf16.msra.mxu1 %v1679_v20  ;;  %v1724_v16 = vld [vmem:[#allocation2 + $0x288] sm:$0xff]   ;;  %v1726_v19 = vld [vmem:[#allocation2] sm:$0xff]   ;;  %vm1422_vm6 = vmpackc.low %vm1107_vm4, %vm1107_vm4 }
  0xbd   : > { %1476 = vmatprep.subr.bf16.mxu0 %v1680_v21  ;;  %1498 = vmatprep.subr.bf16.mxu1 %v1681_v22  ;;  %v1727_v20 = vld [vmem:[#allocation2 + $0x280] sm:$0xff]   ;;  %v1223_v52 = vpop.permute.xlu1 %1222 }
  0xc0   : > { %1477 = vmatpush3.bf16.msra.mxu0 %v1682_v23  ;;  %1499 = vmatpush3.bf16.msra.mxu1 %v1683_v24 }
  0xc1   : > { %1478 = vmatprep.subr.bf16.mxu0 %v1684_v25  ;;  %1500 = vmatprep.subr.bf16.mxu1 %v1685_v26 }
  0xc4   : > { %1479 = vmatpush3.bf16.msra.mxu0 %v1686_v27  ;;  %1501 = vmatpush3.bf16.msra.mxu1 %v1687_v28 }
  0xc5   : > { %1480 = vmatprep.subr.bf16.mxu0 %v1688_v29  ;;  %1502 = vmatprep.subr.bf16.mxu1 %v1689_v30 }
  0xc8   : > { %1481 = vmatpush3.bf16.msra.mxu0 %v1690_v31  ;;  %1503 = vmatpush3.bf16.msra.mxu1 %v1691_v32 }
  0xc9   : > { %1482 = vmatprep.subr.bf16.mxu0 %v1692_v33  ;;  %1504 = vmatprep.subr.bf16.mxu1 %v1693_v34 }
  0xcc   : > { %1483 = vmatpush3.bf16.msra.mxu0 %v1694_v37  ;;  %1505 = vmatpush3.bf16.msra.mxu1 %v1695_v38  ;;  %v1216_v37 = vunpack.c.l.bf16 %v1215_v36 }
  0xcd   : > { %1484 = vmatprep.subr.bf16.mxu0 %v1696_v39  ;;  %1506 = vmatprep.subr.bf16.mxu1 %v1697_v40  ;;  %v1226_v39 = vshrl.u32 %v184_v44, 7 }
  0xce   : > { %v1218_v38 = vrot.slane %v1216_v37, 7 }
  0xcf   : > { %v1232_v50 = vsub.s32 0, %v1226_v39 }
  0xd0   : > { %1485 = vmatpush3.bf16.msra.mxu0 %v1698_v43  ;;  %1507 = vmatpush3.bf16.msra.mxu1 %v1699_v47  ;;  %v1220_v42 = vsub.f32 %v1216_v37, %v1218_v38  ;;  %v1227_v43 = vsub.s32 1, %v1226_v39 }
  0xd1   : > { %1486 = vmatprep.subr.bf16.mxu0 %v1700_v48  ;;  %1508 = vmatprep.subr.bf16.mxu1 %v1701_v49  ;;  %v1233_v56 = vrot.slane %v1216_v37, %v1232_v50 }
  0xd2   : > { %v1228_v49 = vrot.slane %v1220_v42, %v1227_v43 }
  0xd4   : > { %1487 = vmatpush3.bf16.msra.mxu0 %v1702_v53  ;;  %1509 = vmatpush3.bf16.msra.mxu1 %v1703_v54  ;;  %v1229_v57 = vmul.f32 %v1228_v49, %v1223_v52 }
  0xd5   : > { %1516 = vmatprep.subr.bf16.mxu0 %v1704_v51  ;;  %1547 = vmatprep.subr.bf16.mxu1 %v1828_v63 }
  0xd7   : > { %921 = vmatmul.mubr.bf16.vlgmr.msra.gmra.mxu0 %v292_v60  ;;  %961 = vmatmul.mubr.bf16.vlgmr.msra.gmra.mxu1 %v294_v62 }
  0xd8   : > { %1517 = vmatpush3.bf16.msra.mxu0 %v1705_v58  ;;  %1548 = vmatpush3.bf16.msra.mxu1 %v1706_v61 }
  0xd9   : > { %1518 = vmatprep.subr.bf16.mxu0 %v1707_v0  ;;  %1549 = vmatprep.subr.bf16.mxu1 %v1828_v63 }
  0xda   : > { %1411 = vmatprep.mubr.msk.bf16.mxu0 %vm1410_vm1, %v1829_v3  ;;  %1563 = vmatprep.mubr.msk.bf16.mxu1 %vm1830_vm2, %v1828_v63 }
  0xdc   : > { %1519 = vmatpush3.bf16.msra.mxu0 %v1708_v59  ;;  %1550 = vmatpush3.bf16.msra.mxu1 %v1709_v1  ;;  %v1234_v59 = vadd.f32 %v1233_v56, %v1229_v57 }
  0xdd   : > { %1520 = vmatprep.subr.bf16.mxu0 %v1710_v2  ;;  %1551 = vmatprep.subr.bf16.mxu1 %v1828_v63 }
  0xe0   : > { %1521 = vmatpush3.bf16.msra.mxu0 %v1711_v46  ;;  %1552 = vmatpush3.bf16.msra.mxu1 %v1712_v4 }
  0xe1   : > { %1522 = vmatprep.subr.bf16.mxu0 %v1713_v5  ;;  %1553 = vmatprep.subr.bf16.mxu1 %v1828_v63 }
  0xe4   : > { %1523 = vmatpush3.bf16.msra.mxu0 %v1714_v6  ;;  %1554 = vmatpush3.bf16.msra.mxu1 %v1715_v7 }
  0xe5   : > { %1524 = vmatprep.subr.bf16.mxu0 %v1716_v8  ;;  %1555 = vmatprep.subr.bf16.mxu1 %v1828_v63 }
  0xe8   : > { %1525 = vmatpush3.bf16.msra.mxu0 %v1717_v9  ;;  %1556 = vmatpush3.bf16.msra.mxu1 %v1718_v10 }
  0xe9   : > { %1526 = vmatprep.subr.bf16.mxu0 %v1719_v11  ;;  %1557 = vmatprep.subr.bf16.mxu1 %v1828_v63 }
  0xec   : > { %1527 = vmatpush3.bf16.msra.mxu0 %v1720_v12  ;;  %1558 = vmatpush3.bf16.msra.mxu1 %v1721_v13 }
  0xed   : > { %1528 = vmatprep.subr.bf16.mxu0 %v1722_v14  ;;  %1559 = vmatprep.subr.bf16.mxu1 %v1828_v63 }
  0xf0   : > { %1529 = vmatpush3.bf16.msra.mxu0 %v1723_v15  ;;  %1560 = vmatpush3.bf16.msra.mxu1 %v1724_v16 }
  0xf1   : > { %1530 = vmatprep.subr.bf16.mxu0 %v1725_v17  ;;  %1561 = vmatprep.subr.bf16.mxu1 %v1828_v63 }
  0xf4   : > { %1531 = vmatpush3.bf16.msra.mxu0 %v1726_v19  ;;  %1562 = vmatpush3.bf16.msra.mxu1 %v1727_v20 }
  0xf7   : > { %1413 = vmatmul.mubr.msk.bf16.vlgmr.msra.gmra.mxu0 %vm1412_vm5, %v1829_v3  ;;  %1564 = vmatmul.mubr.msk.bf16.vlgmr.msra.gmra.mxu1 %vm1422_vm6, %v1829_v3 }
 0x177   : > { %v1444_v21 = vpop.f32.mrf.mxu0  ;;  %v1466_v22 = vpop.f32.mrf.mxu1 }
 0x179   : > { %v1445_v23 = vpop.f32.mrf.mxu0  ;;  %v1467_v24 = vpop.f32.mrf.mxu1 }
 0x17a   : > { %v1446_v40 = vadd.f32 %v1445_v23, %v1444_v21  ;;  %v1468_v41 = vadd.f32 %v1467_v24, %v1466_v22 }
 0x17b   : > { %v1447_v25 = vpop.f32.mrf.mxu0  ;;  %v1469_v26 = vpop.f32.mrf.mxu1 }
 0x17c   : > { %v883_v48 = vadd.f32 %v1468_v41, %v1446_v40 }
 0x17d   : > { %v1448_v27 = vpop.f32.mrf.mxu0  ;;  %v1470_v28 = vpop.f32.mrf.mxu1 }
 0x197   : > { %v1488_v29 = vpop.f32.mrf.mxu0  ;;  %v1510_v30 = vpop.f32.mrf.mxu1 }
 0x199   : > { %v1489_v31 = vpop.f32.mrf.mxu0  ;;  %v1511_v32 = vpop.f32.mrf.mxu1 }
 0x19a   : > { %v1490_v47 = vadd.f32 %v1489_v31, %v1488_v29  ;;  %v1512_v55 = vadd.f32 %v1511_v32, %v1510_v30 }
 0x19b   : > { %v1491_v33 = vpop.f32.mrf.mxu0  ;;  %v1513_v45 = vpop.f32.mrf.mxu1 }
 0x19c   : > { %v923_v53 = vadd.f32 %v1490_v47, %v883_v48 }
 0x19d   : > { %v1492_v34 = vpop.f32.mrf.mxu0  ;;  %v1514_v35 = vpop.f32.mrf.mxu1 }
 0x19e   : > { %v963_v61 = vadd.f32 %v1512_v55, %v923_v53 }
 0x1b7   : > { %v1532_v54 = vpop.f32.mrf.mxu0  ;;  %v1208_v51 = vpop.f32.mrf.mxu1 }
 0x1b9   : > { %v1533_v58 = vpop.f32.mrf.mxu0  ;;  %v1565_v44 = vpop.f32.mrf.mxu1 }
 0x1ba   : > { %v1534_v60 = vadd.f32 %v1533_v58, %v1532_v54 }
 0x1bb   : > { %v1535_v62 = vpop.f32.mrf.mxu0  ;;  %v1211_v63 = vpop.f32.mrf.mxu1 }
 0x1bc   : > { %v1099_v0 = vadd.f32 %v1534_v60, %v963_v61 }
 0x1bd   : > { %v1536_v1 = vpop.f32.mrf.mxu0  ;;  %v1566_v2 = vpop.f32.mrf.mxu1 }
 0x1be   : > { %v1214_v3 = vadd.f32 %v1208_v51, %v1099_v0 }
 0x1c0   : > { %v1235_v46 = vadd.f32 %v1234_v59, %v1214_v3 }
 0x1c2   : > { %1236 = vst [vmem:[%s176_s24] sm:$0xff] %v1235_v46 }
 0x1c3   : > { %1767 = shalt.err (!%p1764_p0)
}
 0x1c4   : > { %s1768_s6 = scalar_lea.hbm %s1249_s28, 128  ;;  %s1772_s9 = scalar_lea.hbm %s2024_s3, 256 }
 0x1c5   : > { %p1769_p1 = scmp.ne.s32.totalorder %s1249_s28, %s1768_s6  ;;  %p1773_p4 = scmp.lt.s32.totalorder %s1249_s28, %s2024_s3 }
 0x1c6   : > { %p1774_p7 = scmp.lt.s32.totalorder %s1772_s9, %s1768_s6 }
 0x1c7   : > { %p1770_p2 = pnand %p1769_p1, %p1890_p5 }
 0x1c8   : > { %p1775_p8 = por %p1774_p7, %p1773_p4 }
 0x1c9   : > { %p1771_p3 = pneg %p1770_p2 }
 0x1cb   : > { %p1776_p6 = pnand %p1775_p8, %p1771_p3 }
 0x1cd   : > { %1779 = shalt.err (!%p1776_p6)
}
 0x1ce   : > { %1573 = dma.vmem_to_hbm [thread:$0]  (%p1890_p5), %s1252_s25, 128, %s1249_s28, %s1238_s29  }
 0x1cf PF: > { %p1585_p9 = scmp.ge.s32.totalorder %s1818_s15, 2  ;;  %s1263_s17 = sand.u32 1, %s1806_s12  }
 0x1d0   : > { %p2028_p10 = scmp.ne.s32.totalorder %s2026_s23, 0  ;;  %s1264_s19 = scalar_lea.sflag [#allocation4], %s1263_s17 }
 0x1d2   : > { %p1580_p11 = pnand %p1585_p9, %p2028_p10 }
 0x1d4   : > { %p1581_p12 = pneg %p1580_p11 }
 0x1d6   : > { %1801 = dma.done.wait (%p1581_p12), %s1264_s19, 128  }
 0x1d7   : > { %1803 = vsyncadd (%p1581_p12), %s1264_s19, 4294967168  ;;  %p14_p13 = scmp.ge.s32.totalorder %s1877_s18, 4   ;;  %s2029_s12 = smov %s1810_s13 }
 0x1d8   : > { %s2030_s13 = smov %s1814_s14  ;;  %s2031_s14 = smov %s1888_s21 }
 0x1d9   : > { %s2032_s15 = smov %s1877_s18  ;;  %16 = sbr.rel (!%p14_p13) target bundleno = 4 (0x4), region = 72 }
 0x1de   :  { %1269 = vsyncpa [#allocation3], 1 }
 0x1df   :  { %1271 = vsyncpa [#allocation3 + $0x1], 1 }
 0x1e0   :  { %1272 = vsyncpa [#allocation4], 1 }
 0x1e1   :  { %1274 = vsyncpa [#allocation4 + $0x1], 1 }

// kernel: tpu_custom_call.1
= control target key start
LH: loop header
LB: loop body
LE: loop exit
PB: predicated region body
PF: predicated region fallthrough
CT: control target
= control target key end

     0   :  { %8 = vsyncpa [#allocation3], 0  ;;  %s2021_s0 = inlined_call_operand.vmem [shape: f32[16,8], index: 0, kind: input, shape index: {}]   ;;  %s2022_s1 = inlined_call_operand.hbm [shape: bf16[1408,128], index: 1, kind: input, shape index: {}]   ;;  %s2023_s2 = inlined_call_operand.vmem [shape: bf16[8,128], index: 2, kind: input, shape index: {}]   ;;  %s2024_s3 = inlined_call_operand.hbm [shape: f32[16,128], index: 3, kind: output, shape index: {}]  }
   0x1   :  { %9 = vsyncpa [#allocation4], 0 }
   0x2   :  { %11 = vsyncpa [#allocation4 + $0x1], 0  ;;  %s1852_s12 = smov 0   ;;  %s1854_s13 = smov 0  }
   0x3   :  { %s1856_s14 = smov 0   ;;  %s1858_s15 = smov 0  }
   0x4 LB: > { %s1873_s16 = sadd.s32 4294967295, %s1818_s15   ;;  %s1322_s17 = sadd.s32 4294967294, %s1818_s15   ;;  %s1818_s15 = sphi %s1858_s15, %s2032_s15   ;;  %s1814_s14 = sphi %s1856_s14, %s2031_s14   ;;  %s1810_s13 = sphi %s1854_s13, %s2030_s13   ;;  %s1806_s12 = sphi %s1852_s12, %s2029_s12  }
   0x5   : > { %s1877_s18 = sadd.s32 1, %s1818_s15   ;;  %s92_s19 = sadd.s32 1, %s1814_s14 }
   0x6   : > { %s89_s20 = ssub.s32 %s1818_s15, %s1877_s18  ;;  %p102_p0 = scmp.ne.s32.totalorder %s1814_s14, %s1810_s13 }
   0x7   : > { %p90_p1 = scmp.eq.s32.totalorder %s89_s20, 0  ;;  %p103_p2 = scmp.eq.s32.totalorder %s1873_s16, 1 }
   0x8   : > { %p108_p3 = scmp.ne.s32.totalorder %s1810_s13, %s1806_s12  ;;  %p109_p4 = scmp.eq.s32.totalorder %s1322_s17, 1 }
   0x9   : > { %s1888_s21 = scalar_select %p90_p1, %s1814_s14, %s92_s19  }
   0xa   : > { %p1890_p5 = por %p103_p2, %p102_p0  ;;  %p1894_p6 = por %p109_p4, %p108_p3 }
   0xb   : > { %p1323_p7 = scmp.ge.s32.totalorder %s1818_s15, 1  ;;  %p116_p8 = scmp.lt.s32.totalorder %s1818_s15, 3 }
   0xc   : > { %s2026_s23 = scalar_select %p1894_p6, 1, 0 }
   0xd   : > { %p1583_p9 = scmp.eq.s32.totalorder %s1873_s16, 0  ;;  %p1901_p10 = pnand %p1323_p7, %p116_p8 }
   0xe   : > { %s1820_s25 = smov [#allocation2]  }
   0xf   : > { %s128_s26 = sshll.u32 %s1820_s25, 4  ;;  %p1575_p11 = pneg %p1901_p10  ;;  %s129_s26 = int_to_ptr.vmem [resolvable:$true] %s128_s26 }
  0x10   : > { %s1739_s27 = scalar_lea.vmem %s129_s26, 11264  ;;  %p1747_p3 = scmp.lt.s32.totalorder %s129_s26, %s129_s26 }
  0x11   : > { %p1576_p12 = pnand %p1583_p9, %p1575_p11  ;;  %p1740_p0 = scmp.ne.s32.totalorder %s129_s26, %s1739_s27 }
  0x12   : > { %p1748_p4 = scmp.lt.s32.totalorder %s1739_s27, %s1739_s27 }
  0x13   : > { %p1730_p13 = pneg %p1576_p12 }
  0x14   : > { %p1749_p6 = por %p1748_p4, %p1747_p3 }
  0x15   : > { %p1742_p1 = pnand %p1740_p0, %p1730_p13 }
  0x17   : > { %p1743_p2 = pneg %p1742_p1 }
  0x19   : > { %p1750_p7 = pnand %p1749_p6, %p1743_p2 }
  0x1b   : > { %1753 = shalt.err (!%p1750_p7)
}
  0x1c   : > { %s1821_s28 = smov 64   ;;  %s1822_s29 = smov 4  }
  0x1d   : > { %1578 = dma.hbm_to_vmem [thread:$0]  (!%p1576_p12), %s2022_s1, 11264, %s129_s26, [#allocation3], %s1821_s28, %s1821_s28, %s1822_s29  }
  0x1e   : > { %154 = sbr.rel (%p1901_p10) target bundleno = 463 (0x1cf), region = 32 }
  0x23   : > { %1797 = dma.done.wait (%p1583_p9), [#allocation3], 11264  }
  0x24   : > { %1799 = vsyncadd (%p1583_p9), [#allocation3], 4294956032  ;;  %p177_p8 = scmp.lt.s32.totalorder %s1873_s16, 1  ;;  %v1823_v0 = vmov 2   ;;  %v1824_v1 = vmov 1   ;;  %v1640_v4 = vld [vmem:[#allocation2 + $0xf8] sm:$0xff]   ;;  %v184_v44 = vlaneseq }
  0x25   : > { %1629 = vset.pattern.permute.xlu0 %v1823_v0  ;;  %1636 = vset.pattern.permute.xlu1 %v1824_v1  ;;  %v1641_v6 = vld [vmem:[#allocation2 + $0x178] sm:$0xff]   ;;  %v1644_v10 = vld [vmem:[#allocation2 + $0xf0] sm:$0xff]   ;;  %v1825_v15 = vmov 4   ;;  %v1826_v16 = vmov 3   ;;  %v1648_v17 = vld [vmem:[#allocation2 + $0xe8] sm:$0xff]   ;;  %v1827_v43 = vmov 0  }
  0x26   : > { %s178_s5 = scalar_select %p177_p8, %s1873_s16, 1  ;;  %1428 = vmatprep.subr.bf16.mxu0 %v1640_v4  ;;  %v1642_v8 = vld [vmem:[#allocation2 + $0xb8] sm:$0xff]   ;;  %1450 = vmatprep.subr.bf16.mxu1 %v1641_v6  ;;  %v1645_v12 = vld [vmem:[#allocation2 + $0x170] sm:$0xff]   ;;  %v1649_v18 = vld [vmem:[#allocation2 + $0x168] sm:$0xff]   ;;  %v1930_v45 = vand.u32 127, %v184_v44 }
  0x27   : > { %v1643_v9 = vld [vmem:[#allocation2 + $0x138] sm:$0xff]   ;;  %1429 = vmatpush3.bf16.msra.mxu0 %v1642_v8  ;;  %v1646_v13 = vld [vmem:[#allocation2 + $0xb0] sm:$0xff]   ;;  %v1650_v19 = vld [vmem:[#allocation2 + $0xa8] sm:$0xff]   ;;  %s174_s17 = sand.u32 1, %s1810_s13   ;;  %s1425_s20 = sshll.u32 %s1873_s16, 7 }
  0x28   : > { %s1329_s6 = sshll.u32 %s178_s5, 3  ;;  %1451 = vmatpush3.bf16.msra.mxu1 %v1643_v9  ;;  %1430 = vmatprep.subr.bf16.mxu0 %v1644_v10  ;;  %v1647_v14 = vld [vmem:[#allocation2 + $0x130] sm:$0xff]   ;;  %v1651_v20 = vld [vmem:[#allocation2 + $0x128] sm:$0xff]   ;;  %v1652_v21 = vld [vmem:[#allocation2 + $0xe0] sm:$0xff]   ;;  %v1933_v46 = vadd.s32 128, %v1930_v45  ;;  %v229_v47 = vadd.s32 384, %v1930_v45  ;;  %s1249_s28 = scalar_lea.hbm %s2024_s3, %s1425_s20 }
  0x29   : > { %s180_s9 = scalar_lea.vmem %s2021_s0, %s1329_s6  ;;  %1452 = vmatprep.subr.bf16.mxu1 %v1645_v12  ;;  %v1653_v22 = vld [vmem:[#allocation2 + $0x160] sm:$0xff]   ;;  %v1656_v25 = vld [vmem:[#allocation2 + $0xd8] sm:$0xff]   ;;  %v1660_v29 = vld [vmem:[#allocation2 + $0xd0] sm:$0xff]   ;;  %v228_v48 = vadd.s32 256, %v1930_v45  ;;  %v231_v49 = vadd.s32 640, %v1930_v45  ;;  %v233_v50 = vadd.s32 896, %v1930_v45 }
  0x2a   : > { %v1923_v2 = vld [vmem:[%s180_s9] sm:$0xff]  ;;  %v1657_v26 = vld [vmem:[#allocation2 + $0x158] sm:$0xff]   ;;  %v1661_v30 = vld [vmem:[#allocation2 + $0x150] sm:$0xff]   ;;  %s1328_s19 = sshll.u32 %s174_s17, 3  ;;  %s1238_s29 = scalar_lea.sflag [#allocation4], %s174_s17 }
  0x2b   : > { %v1567_v3 = vtrunc.f32 %v1923_v2  ;;  %v253_v5 = vsub.f32 1.0, %v1923_v2  ;;  %1431 = vmatpush3.bf16.msra.mxu0 %v1646_v13  ;;  %v1654_v23 = vld [vmem:[#allocation2 + $0xa0] sm:$0xff]   ;;  %v1658_v27 = vld [vmem:[#allocation2 + $0x98] sm:$0xff]   ;;  %v1662_v31 = vld [vmem:[#allocation2 + $0x90] sm:$0xff]   ;;  %s176_s24 = scalar_lea.vmem [#allocation5], %s1328_s19  ;;  %s1831_s4 = smov [#allocation5]  }
  0x2c   : > { %1453 = vmatpush3.bf16.msra.mxu1 %v1647_v14  ;;  %1432 = vmatprep.subr.bf16.mxu0 %v1648_v17  ;;  %v1655_v24 = vld [vmem:[#allocation2 + $0x120] sm:$0xff]   ;;  %v1659_v28 = vld [vmem:[#allocation2 + $0x118] sm:$0xff]   ;;  %v1663_v32 = vld [vmem:[#allocation2 + $0x110] sm:$0xff]   ;;  %s1251_s25 = sshll.u32 %s176_s24, 4  ;;  %s1758_s5 = sshll.u32 %s1831_s4, 4  ;;  %s1252_s25 = int_to_ptr.vmem [resolvable:$true] %s1251_s25  ;;  %s1759_s5 = int_to_ptr.vmem [resolvable:$false] %s1758_s5 }
  0x2d   : > { %v1568_v7 = vcvt.f32.s32 %v1567_v3  ;;  %v1631_v11 = vpack.i.bf16 %v253_v5, %v1923_v2  ;;  %1454 = vmatprep.subr.bf16.mxu1 %v1649_v18  ;;  %v1664_v33 = vld [vmem:[#allocation2 + $0xc8] sm:$0xff]   ;;  %v1668_v37 = vld [vmem:[#allocation2 + $0xc0] sm:$0xff]   ;;  %v1672_v41 = vld [vmem:[#allocation2 + $0x1f8] sm:$0xff]   ;;  %s1754_s30 = scalar_lea.vmem %s1252_s25, 128  ;;  %s1760_s16 = scalar_lea.vmem %s1759_s5, 256 }
  0x2e   : > { %v1665_v34 = vld [vmem:[#allocation2 + $0x148] sm:$0xff]   ;;  %v1669_v38 = vld [vmem:[#allocation2 + $0x140] sm:$0xff]   ;;  %v1673_v42 = vld [vmem:[#allocation2 + $0x278] sm:$0xff]   ;;  %p1755_p6 = scmp.ne.s32.totalorder %s1252_s25, %s1754_s30  ;;  %p1761_p11 = scmp.lt.s32.totalorder %s1252_s25, %s1759_s5 }
  0x2f   : > { %235 = vperm.xlu0 %1629, %v1568_v7   ;;  %188 = vperm.xlu1 %1636, %v1568_v7   ;;  %v1666_v35 = vld [vmem:[#allocation2 + $0x88] sm:$0xff]   ;;  %v1670_v39 = vld [vmem:[#allocation2 + $0x80] sm:$0xff]   ;;  %v1674_v9 = vld [vmem:[#allocation2 + $0x1b8] sm:$0xff]   ;;  %p1762_p12 = scmp.lt.s32.totalorder %s1760_s16, %s1754_s30 }
  0x30   : > { %1433 = vmatpush3.bf16.msra.mxu0 %v1650_v19  ;;  %1455 = vmatpush3.bf16.msra.mxu1 %v1651_v20  ;;  %v1667_v36 = vld [vmem:[#allocation2 + $0x108] sm:$0xff]   ;;  %v1671_v40 = vld [vmem:[#allocation2 + $0x100] sm:$0xff]   ;;  %v1675_v10 = vld [vmem:[#allocation2 + $0x238] sm:$0xff]   ;;  %p1756_p9 = pnand %p1755_p6, %p1890_p5 }
  0x31   : > { %1434 = vmatprep.subr.bf16.mxu0 %v1652_v21  ;;  %1456 = vmatprep.subr.bf16.mxu1 %v1653_v22  ;;  %v1678_v19 = vld [vmem:[#allocation2 + $0x1b0] sm:$0xff]   ;;  %v1680_v21 = vld [vmem:[#allocation2 + $0x1e8] sm:$0xff]   ;;  %p1763_p13 = por %p1762_p12, %p1761_p11 }
  0x32   : > { %v1679_v20 = vld [vmem:[#allocation2 + $0x230] sm:$0xff]   ;;  %v1681_v22 = vld [vmem:[#allocation2 + $0x268] sm:$0xff]   ;;  %p1757_p10 = pneg %p1756_p9 }
  0x33   : > { %1630 = vset.pattern.permute.xlu0 %v1825_v15  ;;  %1637 = vset.pattern.permute.xlu1 %v1826_v16  ;;  %v1676_v15 = vld [vmem:[#allocation2 + $0x1f0] sm:$0xff]  }
  0x34   : > { %1632 = vperm.xlu0 %1630, %v1631_v11   ;;  %1105 = vperm.xlu1 %1637, %v1568_v7   ;;  %v1677_v16 = vld [vmem:[#allocation2 + $0x270] sm:$0xff]   ;;  %p1764_p0 = pnand %p1763_p13, %p1757_p10 }
  0x35   : > { %1435 = vmatpush3.bf16.msra.mxu0 %v1654_v23  ;;  %1457 = vmatpush3.bf16.msra.mxu1 %v1655_v24  ;;  %v1682_v23 = vld [vmem:[#allocation2 + $0x1a8] sm:$0xff]  }
  0x36   : > { %1436 = vmatprep.subr.bf16.mxu0 %v1656_v25  ;;  %1458 = vmatprep.subr.bf16.mxu1 %v1657_v26  ;;  %v1683_v24 = vld [vmem:[#allocation2 + $0x228] sm:$0xff]   ;;  %v1684_v25 = vld [vmem:[#allocation2 + $0x1e0] sm:$0xff]  }
  0x37   : > { %v1685_v26 = vld [vmem:[#allocation2 + $0x260] sm:$0xff]  }
  0x38   : > { %1638 = vset.pattern.permute.xlu1 %v1827_v43  ;;  %1639 = vset.pattern.permute.xlu0 %v1827_v43  ;;  %v1698_v43 = vld [vmem:[#allocation2 + $0x188] sm:$0xff]  }
  0x39   : > { %1437 = vmatpush3.bf16.msra.mxu0 %v1658_v27  ;;  %1459 = vmatpush3.bf16.msra.mxu1 %v1659_v28  ;;  %v1686_v27 = vld [vmem:[#allocation2 + $0x1a0] sm:$0xff]  }
  0x3a   : > { %1438 = vmatprep.subr.bf16.mxu0 %v1660_v29  ;;  %1460 = vmatprep.subr.bf16.mxu1 %v1661_v30  ;;  %v1687_v28 = vld [vmem:[#allocation2 + $0x220] sm:$0xff]   ;;  %v1688_v29 = vld [vmem:[#allocation2 + $0x1d8] sm:$0xff]  }
  0x3b   : > { %1222 = vperm.xlu1 %1638, %v1923_v2   ;;  %v1689_v30 = vld [vmem:[#allocation2 + $0x258] sm:$0xff]  }
  0x3d   : > { %1439 = vmatpush3.bf16.msra.mxu0 %v1662_v31  ;;  %1461 = vmatpush3.bf16.msra.mxu1 %v1663_v32  ;;  %v1690_v31 = vld [vmem:[#allocation2 + $0x198] sm:$0xff]  }
  0x3e   : > { %1440 = vmatprep.subr.bf16.mxu0 %v1664_v33  ;;  %1462 = vmatprep.subr.bf16.mxu1 %v1665_v34  ;;  %v1691_v32 = vld [vmem:[#allocation2 + $0x218] sm:$0xff]   ;;  %v1692_v33 = vld [vmem:[#allocation2 + $0x1d0] sm:$0xff]  }
  0x3f   : > { %v1693_v34 = vld [vmem:[#allocation2 + $0x250] sm:$0xff]  }
  0x41   : > { %1441 = vmatpush3.bf16.msra.mxu0 %v1666_v35  ;;  %1463 = vmatpush3.bf16.msra.mxu1 %v1667_v36  ;;  %v230_v35 = vadd.s32 512, %v1930_v45  ;;  %v232_v36 = vadd.s32 768, %v1930_v45 }
  0x42   : > { %1442 = vmatprep.subr.bf16.mxu0 %v1668_v37  ;;  %1464 = vmatprep.subr.bf16.mxu1 %v1669_v38  ;;  %v1694_v37 = vld [vmem:[#allocation2 + $0x190] sm:$0xff]  }
  0x43   : > { %v1695_v38 = vld [vmem:[#allocation2 + $0x210] sm:$0xff]  }
  0x45   : > { %1443 = vmatpush3.bf16.msra.mxu0 %v1670_v39  ;;  %1465 = vmatpush3.bf16.msra.mxu1 %v1671_v40  ;;  %v1696_v39 = vld [vmem:[#allocation2 + $0x1c8] sm:$0xff]  }
  0x46   : > { %1472 = vmatprep.subr.bf16.mxu0 %v1672_v41  ;;  %1494 = vmatprep.subr.bf16.mxu1 %v1673_v42  ;;  %v1697_v40 = vld [vmem:[#allocation2 + $0x248] sm:$0xff]  }
  0xaa   : > { %v1939_v51 = vpop.permute.xlu0 %235 }
  0xab   : > { %v238_v52 = vsub.s32 %v1933_v46, %v1939_v51  ;;  %v240_v53 = vsub.s32 %v229_v47, %v1939_v51  ;;  %v237_v54 = vsub.s32 %v1930_v45, %v1939_v51  ;;  %v239_v55 = vsub.s32 %v228_v48, %v1939_v51  ;;  %v1699_v47 = vld [vmem:[#allocation2 + $0x208] sm:$0xff]   ;;  %v1700_v48 = vld [vmem:[#allocation2 + $0x1c0] sm:$0xff]  }
  0xac   : > { %v242_v56 = vsub.s32 %v231_v49, %v1939_v51  ;;  %v244_v57 = vsub.s32 %v233_v50, %v1939_v51  ;;  %v241_v41 = vsub.s32 %v230_v35, %v1939_v51  ;;  %v243_v42 = vsub.s32 %v232_v36, %v1939_v51  ;;  %v1701_v49 = vld [vmem:[#allocation2 + $0x240] sm:$0xff]   ;;  %v1704_v51 = vld [vmem:[#allocation2 + $0x78] sm:$0xff]  }
  0xad   : > { %vm246_vm0 = vcmp.eq.s32.totalorder %v238_v52, 0  ;;  %vm255_vm1 = vcmp.eq.s32.totalorder %v238_v52, 1  ;;  %vm248_vm2 = vcmp.eq.s32.totalorder %v240_v53, 0  ;;  %vm257_vm3 = vcmp.eq.s32.totalorder %v240_v53, 1  ;;  %v1702_v53 = vld [vmem:[#allocation2 + $0x180] sm:$0xff]  }
  0xae   : > { %vm245_vm4 = vcmp.eq.s32.totalorder %v237_v54, 0  ;;  %vm254_vm5 = vcmp.eq.s32.totalorder %v237_v54, 1  ;;  %vm247_vm6 = vcmp.eq.s32.totalorder %v239_v55, 0  ;;  %vm256_vm7 = vcmp.eq.s32.totalorder %v239_v55, 1  ;;  %v1703_v54 = vld [vmem:[#allocation2 + $0x200] sm:$0xff]  }
  0xaf   : > { %v1633_v58 = vpop.permute.xlu0 %1632  ;;  %vm259_vm8 = vcmp.eq.s32.totalorder %v242_v56, 1  ;;  %vm261_vm9 = vcmp.eq.s32.totalorder %v244_v57, 1  ;;  %vm250_vm10 = vcmp.eq.s32.totalorder %v242_v56, 0  ;;  %vm252_vm11 = vcmp.eq.s32.totalorder %v244_v57, 0  ;;  %v1976_v57 = vpop.permute.xlu1 %188  ;;  %v1215_v36 = vld [vmem:[%s2023_s2] sm:$0x1] }
  0xb0   : > { %v1949_v59 = vunpack.i.h.bf16 %v1633_v58  ;;  %v1951_v60 = vunpack.i.l.bf16 %v1633_v58  ;;  %vm258_vm12 = vcmp.eq.s32.totalorder %v241_v41, 1  ;;  %vm260_vm13 = vcmp.eq.s32.totalorder %v243_v42, 1  ;;  %v1705_v58 = vld [vmem:[#allocation2 + $0x38] sm:$0xff]  }
  0xb1   : > { %vm249_vm14 = vcmp.eq.s32.totalorder %v241_v41, 0  ;;  %vm251_vm15 = vcmp.eq.s32.totalorder %v243_v42, 0 }
  0xb2   : > { %v268_v61 = vsel %vm255_vm1, %v1951_v60, 0.0  ;;  %v270_v62 = vsel %vm257_vm3, %v1951_v60, 0.0  ;;  %v267_v63 = vsel %vm254_vm5, %v1951_v60, 0.0  ;;  %v269_v0 = vsel %vm256_vm7, %v1951_v60, 0.0 }
  0xb3   : > { %v281_v1 = vsel %vm246_vm0, %v1949_v59, %v268_v61  ;;  %v283_v2 = vsel %vm248_vm2, %v1949_v59, %v270_v62  ;;  %v280_v3 = vsel %vm245_vm4, %v1949_v59, %v267_v63  ;;  %v282_v4 = vsel %vm247_vm6, %v1949_v59, %v269_v0  ;;  %v1706_v61 = vld [vmem:[#allocation2 + $0x2b8] sm:$0xff]   ;;  %v1707_v0 = vld [vmem:[#allocation2 + $0x70] sm:$0xff]  }
  0xb4   : > { %v289_v5 = vpack.c.bf16 %v281_v1, %v281_v1  ;;  %v291_v6 = vpack.c.bf16 %v283_v2, %v283_v2  ;;  %v288_v7 = vpack.c.bf16 %v280_v3, %v280_v3  ;;  %v290_v8 = vpack.c.bf16 %v282_v4, %v282_v4  ;;  %v1709_v1 = vld [vmem:[#allocation2 + $0x2b0] sm:$0xff]   ;;  %v1710_v2 = vld [vmem:[#allocation2 + $0x68] sm:$0xff]  }
  0xb5   : > { %v272_v11 = vsel %vm259_vm8, %v1951_v60, 0.0  ;;  %v274_v12 = vsel %vm261_vm9, %v1951_v60, 0.0  ;;  %v271_v50 = vsel %vm258_vm12, %v1951_v60, 0.0  ;;  %v273_v52 = vsel %vm260_vm13, %v1951_v60, 0.0  ;;  %v1712_v4 = vld [vmem:[#allocation2 + $0x2a8] sm:$0xff]  }
  0xb6   : > { %840 = vmatprep.mubr.bf16.mxu0 %v289_v5  ;;  %880 = vmatprep.mubr.bf16.mxu1 %v291_v6  ;;  %v285_v13 = vsel %vm250_vm10, %v1949_v59, %v272_v11  ;;  %v287_v14 = vsel %vm252_vm11, %v1949_v59, %v274_v12  ;;  %v284_v55 = vsel %vm249_vm14, %v1949_v59, %v271_v50  ;;  %v1828_v63 = vmov 0.0   ;;  %v1713_v5 = vld [vmem:[#allocation2 + $0x60] sm:$0xff]   ;;  %v1719_v11 = vld [vmem:[#allocation2 + $0x50] sm:$0xff]  }
  0xb7   : > { %841 = vmatmul.mubr.bf16.vlgmr.msra.gmra.mxu0 %v288_v7  ;;  %881 = vmatmul.mubr.bf16.vlgmr.msra.gmra.mxu1 %v290_v8  ;;  %v293_v17 = vpack.c.bf16 %v285_v13, %v285_v13  ;;  %v295_v18 = vpack.c.bf16 %v287_v14, %v287_v14  ;;  %v286_v56 = vsel %vm251_vm15, %v1949_v59, %v273_v52  ;;  %v1708_v59 = vld [vmem:[#allocation2 + $0x30] sm:$0xff]   ;;  %v1829_v3 = vmov 1.0|1.0   ;;  %v1714_v6 = vld [vmem:[#allocation2 + $0x20] sm:$0xff]   ;;  %v1716_v8 = vld [vmem:[#allocation2 + $0x58] sm:$0xff]  }
  0xb8   : > { %1473 = vmatpush3.bf16.msra.mxu0 %v1674_v9  ;;  %1495 = vmatpush3.bf16.msra.mxu1 %v1675_v10  ;;  %vm191_vm0 = vcmp.eq.s32.totalorder %v1933_v46, %v1976_v57  ;;  %v292_v60 = vpack.c.bf16 %v284_v55, %v284_v55  ;;  %v294_v62 = vpack.c.bf16 %v286_v56, %v286_v56  ;;  %vm1830_vm2 = vmmov 0   ;;  %v1711_v46 = vld [vmem:[#allocation2 + $0x28] sm:$0xff]   ;;  %v1715_v7 = vld [vmem:[#allocation2 + $0x2a0] sm:$0xff]   ;;  %v1717_v9 = vld [vmem:[#allocation2 + $0x18] sm:$0xff]  }
  0xb9   : > { %920 = vmatprep.mubr.bf16.mxu0 %v293_v17  ;;  %960 = vmatprep.mubr.bf16.mxu1 %v295_v18  ;;  %vm1410_vm1 = vmpackc.low %vm191_vm0, %vm191_vm0  ;;  %v1718_v10 = vld [vmem:[#allocation2 + $0x298] sm:$0xff]   ;;  %v1720_v12 = vld [vmem:[#allocation2 + $0x10] sm:$0xff]   ;;  %v1106_v18 = vpop.permute.xlu1 %1105  ;;  %vm190_vm3 = vcmp.eq.s32.totalorder %v1930_v45, %v1976_v57 }
  0xba   : > { %1474 = vmatprep.subr.bf16.mxu0 %v1676_v15  ;;  %1496 = vmatprep.subr.bf16.mxu1 %v1677_v16  ;;  %v1721_v13 = vld [vmem:[#allocation2 + $0x290] sm:$0xff]   ;;  %v1722_v14 = vld [vmem:[#allocation2 + $0x48] sm:$0xff]   ;;  %v1725_v17 = vld [vmem:[#allocation2 + $0x40] sm:$0xff]   ;;  %vm1107_vm4 = vcmp.eq.s32.totalorder %v1930_v45, %v1106_v18 }
  0xbb   : > { %v1723_v15 = vld [vmem:[#allocation2 + $0x8] sm:$0xff]   ;;  %vm1412_vm5 = vmpackc.low %vm190_vm3, %vm190_vm3 }
  0xbc   : > { %1475 = vmatpush3.bf16.msra.mxu0 %v1678_v19  ;;  %1497 = vmatpush3.bf16.msra.mxu1 %v1679_v20  ;;  %v1724_v16 = vld [vmem:[#allocation2 + $0x288] sm:$0xff]   ;;  %v1726_v19 = vld [vmem:[#allocation2] sm:$0xff]   ;;  %vm1422_vm6 = vmpackc.low %vm1107_vm4, %vm1107_vm4 }
  0xbd   : > { %1476 = vmatprep.subr.bf16.mxu0 %v1680_v21  ;;  %1498 = vmatprep.subr.bf16.mxu1 %v1681_v22  ;;  %v1727_v20 = vld [vmem:[#allocation2 + $0x280] sm:$0xff]   ;;  %v1223_v52 = vpop.permute.xlu1 %1222 }
  0xc0   : > { %1477 = vmatpush3.bf16.msra.mxu0 %v1682_v23  ;;  %1499 = vmatpush3.bf16.msra.mxu1 %v1683_v24 }
  0xc1   : > { %1478 = vmatprep.subr.bf16.mxu0 %v1684_v25  ;;  %1500 = vmatprep.subr.bf16.mxu1 %v1685_v26 }
  0xc4   : > { %1479 = vmatpush3.bf16.msra.mxu0 %v1686_v27  ;;  %1501 = vmatpush3.bf16.msra.mxu1 %v1687_v28 }
  0xc5   : > { %1480 = vmatprep.subr.bf16.mxu0 %v1688_v29  ;;  %1502 = vmatprep.subr.bf16.mxu1 %v1689_v30 }
  0xc8   : > { %1481 = vmatpush3.bf16.msra.mxu0 %v1690_v31  ;;  %1503 = vmatpush3.bf16.msra.mxu1 %v1691_v32 }
  0xc9   : > { %1482 = vmatprep.subr.bf16.mxu0 %v1692_v33  ;;  %1504 = vmatprep.subr.bf16.mxu1 %v1693_v34 }
  0xcc   : > { %1483 = vmatpush3.bf16.msra.mxu0 %v1694_v37  ;;  %1505 = vmatpush3.bf16.msra.mxu1 %v1695_v38  ;;  %v1216_v37 = vunpack.c.l.bf16 %v1215_v36 }
  0xcd   : > { %1484 = vmatprep.subr.bf16.mxu0 %v1696_v39  ;;  %1506 = vmatprep.subr.bf16.mxu1 %v1697_v40  ;;  %v1226_v39 = vshrl.u32 %v184_v44, 7 }
  0xce   : > { %v1218_v38 = vrot.slane %v1216_v37, 7 }
  0xcf   : > { %v1232_v50 = vsub.s32 0, %v1226_v39 }
  0xd0   : > { %1485 = vmatpush3.bf16.msra.mxu0 %v1698_v43  ;;  %1507 = vmatpush3.bf16.msra.mxu1 %v1699_v47  ;;  %v1220_v42 = vsub.f32 %v1216_v37, %v1218_v38  ;;  %v1227_v43 = vsub.s32 1, %v1226_v39 }
  0xd1   : > { %1486 = vmatprep.subr.bf16.mxu0 %v1700_v48  ;;  %1508 = vmatprep.subr.bf16.mxu1 %v1701_v49  ;;  %v1233_v56 = vrot.slane %v1216_v37, %v1232_v50 }
  0xd2   : > { %v1228_v49 = vrot.slane %v1220_v42, %v1227_v43 }
  0xd4   : > { %1487 = vmatpush3.bf16.msra.mxu0 %v1702_v53  ;;  %1509 = vmatpush3.bf16.msra.mxu1 %v1703_v54  ;;  %v1229_v57 = vmul.f32 %v1228_v49, %v1223_v52 }
  0xd5   : > { %1516 = vmatprep.subr.bf16.mxu0 %v1704_v51  ;;  %1547 = vmatprep.subr.bf16.mxu1 %v1828_v63 }
  0xd7   : > { %921 = vmatmul.mubr.bf16.vlgmr.msra.gmra.mxu0 %v292_v60  ;;  %961 = vmatmul.mubr.bf16.vlgmr.msra.gmra.mxu1 %v294_v62 }
  0xd8   : > { %1517 = vmatpush3.bf16.msra.mxu0 %v1705_v58  ;;  %1548 = vmatpush3.bf16.msra.mxu1 %v1706_v61 }
  0xd9   : > { %1518 = vmatprep.subr.bf16.mxu0 %v1707_v0  ;;  %1549 = vmatprep.subr.bf16.mxu1 %v1828_v63 }
  0xda   : > { %1411 = vmatprep.mubr.msk.bf16.mxu0 %vm1410_vm1, %v1829_v3  ;;  %1563 = vmatprep.mubr.msk.bf16.mxu1 %vm1830_vm2, %v1828_v63 }
  0xdc   : > { %1519 = vmatpush3.bf16.msra.mxu0 %v1708_v59  ;;  %1550 = vmatpush3.bf16.msra.mxu1 %v1709_v1  ;;  %v1234_v59 = vadd.f32 %v1233_v56, %v1229_v57 }
  0xdd   : > { %1520 = vmatprep.subr.bf16.mxu0 %v1710_v2  ;;  %1551 = vmatprep.subr.bf16.mxu1 %v1828_v63 }
  0xe0   : > { %1521 = vmatpush3.bf16.msra.mxu0 %v1711_v46  ;;  %1552 = vmatpush3.bf16.msra.mxu1 %v1712_v4 }
  0xe1   : > { %1522 = vmatprep.subr.bf16.mxu0 %v1713_v5  ;;  %1553 = vmatprep.subr.bf16.mxu1 %v1828_v63 }
  0xe4   : > { %1523 = vmatpush3.bf16.msra.mxu0 %v1714_v6  ;;  %1554 = vmatpush3.bf16.msra.mxu1 %v1715_v7 }
  0xe5   : > { %1524 = vmatprep.subr.bf16.mxu0 %v1716_v8  ;;  %1555 = vmatprep.subr.bf16.mxu1 %v1828_v63 }
  0xe8   : > { %1525 = vmatpush3.bf16.msra.mxu0 %v1717_v9  ;;  %1556 = vmatpush3.bf16.msra.mxu1 %v1718_v10 }
  0xe9   : > { %1526 = vmatprep.subr.bf16.mxu0 %v1719_v11  ;;  %1557 = vmatprep.subr.bf16.mxu1 %v1828_v63 }
  0xec   : > { %1527 = vmatpush3.bf16.msra.mxu0 %v1720_v12  ;;  %1558 = vmatpush3.bf16.msra.mxu1 %v1721_v13 }
  0xed   : > { %1528 = vmatprep.subr.bf16.mxu0 %v1722_v14  ;;  %1559 = vmatprep.subr.bf16.mxu1 %v1828_v63 }
  0xf0   : > { %1529 = vmatpush3.bf16.msra.mxu0 %v1723_v15  ;;  %1560 = vmatpush3.bf16.msra.mxu1 %v1724_v16 }
  0xf1   : > { %1530 = vmatprep.subr.bf16.mxu0 %v1725_v17  ;;  %1561 = vmatprep.subr.bf16.mxu1 %v1828_v63 }
  0xf4   : > { %1531 = vmatpush3.bf16.msra.mxu0 %v1726_v19  ;;  %1562 = vmatpush3.bf16.msra.mxu1 %v1727_v20 }
  0xf7   : > { %1413 = vmatmul.mubr.msk.bf16.vlgmr.msra.gmra.mxu0 %vm1412_vm5, %v1829_v3  ;;  %1564 = vmatmul.mubr.msk.bf16.vlgmr.msra.gmra.mxu1 %vm1422_vm6, %v1829_v3 }
 0x177   : > { %v1444_v21 = vpop.f32.mrf.mxu0  ;;  %v1466_v22 = vpop.f32.mrf.mxu1 }
 0x179   : > { %v1445_v23 = vpop.f32.mrf.mxu0  ;;  %v1467_v24 = vpop.f32.mrf.mxu1 }
 0x17a   : > { %v1446_v40 = vadd.f32 %v1445_v23, %v1444_v21  ;;  %v1468_v41 = vadd.f32 %v1467_v24, %v1466_v22 }
 0x17b   : > { %v1447_v25 = vpop.f32.mrf.mxu0  ;;  %v1469_v26 = vpop.f32.mrf.mxu1 }
 0x17c   : > { %v883_v48 = vadd.f32 %v1468_v41, %v1446_v40 }
 0x17d   : > { %v1448_v27 = vpop.f32.mrf.mxu0  ;;  %v1470_v28 = vpop.f32.mrf.mxu1 }
 0x197   : > { %v1488_v29 = vpop.f32.mrf.mxu0  ;;  %v1510_v30 = vpop.f32.mrf.mxu1 }
 0x199   : > { %v1489_v31 = vpop.f32.mrf.mxu0  ;;  %v1511_v32 = vpop.f32.mrf.mxu1 }
 0x19a   : > { %v1490_v47 = vadd.f32 %v1489_v31, %v1488_v29  ;;  %v1512_v55 = vadd.f32 %v1511_v32, %v1510_v30 }
 0x19b   : > { %v1491_v33 = vpop.f32.mrf.mxu0  ;;  %v1513_v45 = vpop.f32.mrf.mxu1 }
 0x19c   : > { %v923_v53 = vadd.f32 %v1490_v47, %v883_v48 }
 0x19d   : > { %v1492_v34 = vpop.f32.mrf.mxu0  ;;  %v1514_v35 = vpop.f32.mrf.mxu1 }
 0x19e   : > { %v963_v61 = vadd.f32 %v1512_v55, %v923_v53 }
 0x1b7   : > { %v1532_v54 = vpop.f32.mrf.mxu0  ;;  %v1208_v51 = vpop.f32.mrf.mxu1 }
 0x1b9   : > { %v1533_v58 = vpop.f32.mrf.mxu0  ;;  %v1565_v44 = vpop.f32.mrf.mxu1 }
 0x1ba   : > { %v1534_v60 = vadd.f32 %v1533_v58, %v1532_v54 }
 0x1bb   : > { %v1535_v62 = vpop.f32.mrf.mxu0  ;;  %v1211_v63 = vpop.f32.mrf.mxu1 }
 0x1bc   : > { %v1099_v0 = vadd.f32 %v1534_v60, %v963_v61 }
 0x1bd   : > { %v1536_v1 = vpop.f32.mrf.mxu0  ;;  %v1566_v2 = vpop.f32.mrf.mxu1 }
 0x1be   : > { %v1214_v3 = vadd.f32 %v1208_v51, %v1099_v0 }
 0x1c0   : > { %v1235_v46 = vadd.f32 %v1234_v59, %v1214_v3 }
 0x1c2   : > { %1236 = vst [vmem:[%s176_s24] sm:$0xff] %v1235_v46 }
 0x1c3   : > { %1767 = shalt.err (!%p1764_p0)
}
 0x1c4   : > { %s1768_s6 = scalar_lea.hbm %s1249_s28, 128  ;;  %s1772_s9 = scalar_lea.hbm %s2024_s3, 256 }
 0x1c5   : > { %p1769_p1 = scmp.ne.s32.totalorder %s1249_s28, %s1768_s6  ;;  %p1773_p4 = scmp.lt.s32.totalorder %s1249_s28, %s2024_s3 }
 0x1c6   : > { %p1774_p7 = scmp.lt.s32.totalorder %s1772_s9, %s1768_s6 }
 0x1c7   : > { %p1770_p2 = pnand %p1769_p1, %p1890_p5 }
 0x1c8   : > { %p1775_p8 = por %p1774_p7, %p1773_p4 }
 0x1c9   : > { %p1771_p3 = pneg %p1770_p2 }
 0x1cb   : > { %p1776_p6 = pnand %p1775_p8, %p1771_p3 }
 0x1cd   : > { %1779 = shalt.err (!%p1776_p6)
}
 0x1ce   : > { %1573 = dma.vmem_to_hbm [thread:$0]  (%p1890_p5), %s1252_s25, 128, %s1249_s28, %s1238_s29  }
 0x1cf PF: > { %p1585_p9 = scmp.ge.s32.totalorder %s1818_s15, 2  ;;  %s1263_s17 = sand.u32 1, %s1806_s12  }
 0x1d0   : > { %p2028_p10 = scmp.ne.s32.totalorder %s2026_s23, 0  ;;  %s1264_s19 = scalar_lea.sflag [#allocation4], %s1263_s17 }
 0x1d2   : > { %p1580_p11 = pnand %p1585_p9, %p2028_p10 }
 0x1d4   : > { %p1581_p12 = pneg %p1580_p11 }
 0x1d6   : > { %1801 = dma.done.wait (%p1581_p12), %s1264_s19, 128  }
 0x1d7   : > { %1803 = vsyncadd (%p1581_p12), %s1264_s19, 4294967168  ;;  %p14_p13 = scmp.ge.s32.totalorder %s1877_s18, 4   ;;  %s2029_s12 = smov %s1810_s13 }
 0x1d8   : > { %s2030_s13 = smov %s1814_s14  ;;  %s2031_s14 = smov %s1888_s21 }
 0x1d9   : > { %s2032_s15 = smov %s1877_s18  ;;  %16 = sbr.rel (!%p14_p13) target bundleno = 4 (0x4), region = 72 }
 0x1de   :  { %1269 = vsyncpa [#allocation3], 1 }
 0x1df   :  { %1271 = vsyncpa [#allocation3 + $0x1], 1 }
 0x1e0   :  { %1272 = vsyncpa [#allocation4], 1 }
 0x1e1   :  { %1274 = vsyncpa [#allocation4 + $0x1], 1 }

</bundles_post_ra>
